<compile_context>
chip_gen: v7x
topology: tpu7x:2x2x1
jax: 0.10.0
libtpu: 0.0.40
codegen_flags: <defaults>
</compile_context>

<pallas_src>
import jax
import jax.numpy as jnp
import numpy as np
from jax import lax
from jax.experimental import pallas as pl
from jax.experimental.pallas import tpu as pltpu


# dot_general dimension numbers for  a @ b.T  (transpose expressed via MXU
# dimension numbers, never materialized in HBM).
_NT = (((1,), (1,)), ((), ()))


def _fullspec(shape):
    """Full-array block for a grid=(1,) pallas_call."""
    n = len(shape)
    return pl.BlockSpec(shape, lambda i, n=n: (0,) * n)


def _sigmoid(v):
    return 1.0 / (1.0 + jnp.exp(-v))


def _eye(n, dtype=jnp.float32):
    rows = lax.broadcasted_iota(jnp.int32, (n, n), 0)
    cols = lax.broadcasted_iota(jnp.int32, (n, n), 1)
    return (rows == cols).astype(dtype)


# ----------------------- fused GCN layer (fwd + bwd) ------------------------

def _gcn_layer_fwd_kernel(x_ref, adj_ref, flags_ref, wl_ref, bl_ref, wc_ref,
                          bc_ref, out_ref):
    B, N, Din = x_ref.shape
    H = wl_ref.shape[1]
    # node-feature path: Linear(Din->H), then DenseGCNConv weight (H->H)
    xf = x_ref[...].reshape(B * N, Din)
    h = jnp.dot(xf, wl_ref[...], preferred_element_type=jnp.float32) + bl_ref[...]
    g = jnp.dot(h, wc_ref[...], preferred_element_type=jnp.float32).reshape(B, N, H)
    # adjacency normalization: overwrite diag with 1, clamp(deg, 1)^-1/2 scaling
    eye = _eye(N)
    a = adj_ref[...] * (1.0 - eye) + eye
    deg = jnp.sum(a, axis=-1)                       # (B, N)  XLU reduce
    s = lax.rsqrt(jnp.maximum(deg, 1.0))            # EUP rsqrt
    an = a * s[:, :, None] * s[:, None, :]
    # propagation (batched MXU matmul) + bias + tanh + node mask, all fused
    z = jnp.einsum('bij,bjh->bih', an, g,
                   preferred_element_type=jnp.float32) + bc_ref[...]
    out_ref[...] = jnp.tanh(z) * flags_ref[...][:, :, None]


def _gcn_layer_bwd_kernel(x_ref, adj_ref, flags_ref, wl_ref, bl_ref, wc_ref,
                          bc_ref, dout_ref, dx_ref, dadj_ref):
    B, N, Din = x_ref.shape
    H = wl_ref.shape[1]
    wl = wl_ref[...]
    wc = wc_ref[...]
    # --- recompute forward intermediates (residuals == primal inputs) ---
    xf = x_ref[...].reshape(B * N, Din)
    h = jnp.dot(xf, wl, preferred_element_type=jnp.float32) + bl_ref[...]
    g = jnp.dot(h, wc, preferred_element_type=jnp.float32).reshape(B, N, H)
    eye = _eye(N)
    a = adj_ref[...] * (1.0 - eye) + eye
    deg = jnp.sum(a, axis=-1)
    dc = jnp.maximum(deg, 1.0)
    s = lax.rsqrt(dc)
    an = a * s[:, :, None] * s[:, None, :]
    z = jnp.einsum('bij,bjh->bih', an, g,
                   preferred_element_type=jnp.float32) + bc_ref[...]
    y = jnp.tanh(z)
    # --- backward ---
    dz = dout_ref[...] * flags_ref[...][:, :, None] * (1.0 - y * y)   # (B,N,H)
    # cotangent of the normalized adjacency:  dAn = dz @ g^T  (contract H)
    d_an = jnp.einsum('bih,bjh->bij', dz, g,
                      preferred_element_type=jnp.float32)
    # chain through  An_ij = s_i * A_ij * s_j ,  s = rsqrt(max(deg, 1))
    t = d_an * a
    ds = (jnp.sum(t * s[:, None, :], axis=2) +
          jnp.sum(t * s[:, :, None], axis=1))                          # (B, N)
    dsdd = jnp.where(deg > 1.0, -0.5 * s / dc, 0.0)
    dd = ds * dsdd
    dadj_ref[...] = (d_an * s[:, :, None] * s[:, None, :]
                     + dd[:, :, None]) * (1.0 - eye)
    # cotangent of the layer input:  dx = ((An^T @ dz) @ Wc^T) @ Wl^T.
    # Per-batch 2D chain; the only transpose is an on-chip vreg transpose.
    for b in range(B):
        dg_b = jnp.dot(an[b].T, dz[b], preferred_element_type=jnp.float32)
        dh_b = lax.dot_general(dg_b, wc, _NT,
                               preferred_element_type=jnp.float32)
        dx_ref[b] = lax.dot_general(dh_b, wl, _NT,
                                    preferred_element_type=jnp.float32)


def _pallas_gcn_layer_fwd(x, adj, flags, wl, bl, wc, bc):
    B, N, Din = x.shape
    H = wl.shape[1]
    return pl.pallas_call(
        _gcn_layer_fwd_kernel,
        out_shape=jax.ShapeDtypeStruct((B, N, H), jnp.float32),
        grid=(1,),
        in_specs=[_fullspec((B, N, Din)), _fullspec((B, N, N)),
                  _fullspec((B, N)), _fullspec((Din, H)), _fullspec((1, H)),
                  _fullspec((H, H)), _fullspec((1, H))],
        out_specs=_fullspec((B, N, H)),
        compiler_params=pltpu.CompilerParams(
            dimension_semantics=("arbitrary",)),
    )(x, adj, flags, wl, bl.reshape(1, H), wc, bc.reshape(1, H))


def _pallas_gcn_layer_bwd(x, adj, flags, wl, bl, wc, bc, dout):
    B, N, Din = x.shape
    H = wl.shape[1]
    return pl.pallas_call(
        _gcn_layer_bwd_kernel,
        out_shape=(jax.ShapeDtypeStruct((B, N, Din), jnp.float32),
                   jax.ShapeDtypeStruct((B, N, N), jnp.float32)),
        grid=(1,),
        in_specs=[_fullspec((B, N, Din)), _fullspec((B, N, N)),
                  _fullspec((B, N)), _fullspec((Din, H)), _fullspec((1, H)),
                  _fullspec((H, H)), _fullspec((1, H)),
                  _fullspec((B, N, H))],
        out_specs=(_fullspec((B, N, Din)), _fullspec((B, N, N))),
        compiler_params=pltpu.CompilerParams(
            dimension_semantics=("arbitrary",)),
    )(x, adj, flags, wl, bl.reshape(1, H), wc, bc.reshape(1, H), dout)


@jax.custom_vjp
def gcn_layer(x, adj, flags, wl, bl, wc, bc):
    """mask_x(tanh(DenseGCNConv(Linear(x), adj)), flags) — one fused kernel."""
    return _pallas_gcn_layer_fwd(x, adj, flags, wl, bl, wc, bc)


def _gcn_layer_fwd_rule(x, adj, flags, wl, bl, wc, bc):
    out = _pallas_gcn_layer_fwd(x, adj, flags, wl, bl, wc, bc)
    return out, (x, adj, flags, wl, bl, wc, bc)


def _gcn_layer_bwd_rule(res, dout):
    x, adj, flags, wl, bl, wc, bc = res
    # hot-path cotangents (layer input + adjacency): one fused Pallas call
    dx, dadj = _pallas_gcn_layer_bwd(x, adj, flags, wl, bl, wc, bc, dout)
    # parameter / flag cotangents in plain JAX: exact, but DCE'd whenever (as
    # in RegressorScoreAdj) only `adj` is differentiated.
    B, N, Din = x.shape
    H = wl.shape[1]
    eye = jnp.eye(N, dtype=jnp.float32)
    a = adj * (1.0 - eye) + eye
    s = lax.rsqrt(jnp.maximum(jnp.sum(a, axis=-1), 1.0))
    an = a * s[:, :, None] * s[:, None, :]
    xf = x.reshape(B * N, Din)
    h = xf @ wl + bl
    g = (h @ wc).reshape(B, N, H)
    y = jnp.tanh(jnp.einsum('bij,bjh->bih', an, g) + bc)
    dz = dout * flags[:, :, None] * (1.0 - y * y)
    dflags = jnp.sum(dout * y, axis=-1)
    dbc = jnp.sum(dz, axis=(0, 1))
    dgf = jnp.einsum('bij,bih->bjh', an, dz).reshape(B * N, H)
    dwc = h.T @ dgf
    dh = dgf @ wc.T
    dbl = jnp.sum(dh, axis=0)
    dwl = xf.T @ dh
    return dx, dadj, dflags, dwl, dbl, dwc, dbc


gcn_layer.defvjp(_gcn_layer_fwd_rule, _gcn_layer_bwd_rule)


# -------------------- fused gated pooling head (fwd + bwd) ------------------

def _head_fwd_kernel(xc_ref, ws_ref, bs_ref, wt_ref, bt_ref, emb_ref):
    B, N, Dc = xc_ref.shape
    H = ws_ref.shape[1]
    xf = xc_ref[...].reshape(B * N, Dc)
    u1 = jnp.dot(xf, ws_ref[...], preferred_element_type=jnp.float32) + bs_ref[...]
    u2 = jnp.dot(xf, wt_ref[...], preferred_element_type=jnp.float32) + bt_ref[...]
    prod = (_sigmoid(u1) * jnp.tanh(u2)).reshape(B, N, H)
    emb_ref[...] = jnp.tanh(jnp.sum(prod, axis=1))


def _head_bwd_kernel(xc_ref, ws_ref, bs_ref, wt_ref, bt_ref, demb_ref, dxc_ref):
    B, N, Dc = xc_ref.shape
    H = ws_ref.shape[1]
    ws = ws_ref[...]
    wt = wt_ref[...]
    xf = xc_ref[...].reshape(B * N, Dc)
    u1 = jnp.dot(xf, ws, preferred_element_type=jnp.float32) + bs_ref[...]
    u2 = jnp.dot(xf, wt, preferred_element_type=jnp.float32) + bt_ref[...]
    sg = _sigmoid(u1).reshape(B, N, H)
    th = jnp.tanh(u2).reshape(B, N, H)
    emb = jnp.tanh(jnp.sum(sg * th, axis=1))                    # (B, H)
    dsum = (demb_ref[...] * (1.0 - emb * emb))[:, None, :]      # (B, 1, H)
    du1 = (dsum * th * sg * (1.0 - sg)).reshape(B * N, H)
    du2 = (dsum * sg * (1.0 - th * th)).reshape(B * N, H)
    dxf = (lax.dot_general(du1, ws, _NT, preferred_element_type=jnp.float32) +
           lax.dot_general(du2, wt, _NT, preferred_element_type=jnp.float32))
    dxc_ref[...] = dxf.reshape(B, N, Dc)


def _pallas_head_fwd(xc, ws, bs, wt, bt):
    B, N, Dc = xc.shape
    H = ws.shape[1]
    return pl.pallas_call(
        _head_fwd_kernel,
        out_shape=jax.ShapeDtypeStruct((B, H), jnp.float32),
        grid=(1,),
        in_specs=[_fullspec((B, N, Dc)), _fullspec((Dc, H)), _fullspec((1, H)),
                  _fullspec((Dc, H)), _fullspec((1, H))],
        out_specs=_fullspec((B, H)),
    )(xc, ws, bs.reshape(1, H), wt, bt.reshape(1, H))


def _pallas_head_bwd(xc, ws, bs, wt, bt, demb):
    B, N, Dc = xc.shape
    H = ws.shape[1]
    return pl.pallas_call(
        _head_bwd_kernel,
        out_shape=jax.ShapeDtypeStruct((B, N, Dc), jnp.float32),
        grid=(1,),
        in_specs=[_fullspec((B, N, Dc)), _fullspec((Dc, H)), _fullspec((1, H)),
                  _fullspec((Dc, H)), _fullspec((1, H)), _fullspec((B, H))],
        out_specs=_fullspec((B, N, Dc)),
    )(xc, ws, bs.reshape(1, H), wt, bt.reshape(1, H), demb)


@jax.custom_vjp
def gated_head(xc, ws, bs, wt, bt):
    """tanh( sum_n sigmoid(xc@Ws+bs) * tanh(xc@Wt+bt) ) — one fused kernel."""
    return _pallas_head_fwd(xc, ws, bs, wt, bt)


def _gated_head_fwd_rule(xc, ws, bs, wt, bt):
    return _pallas_head_fwd(xc, ws, bs, wt, bt), (xc, ws, bs, wt, bt)


def _gated_head_bwd_rule(res, demb):
    xc, ws, bs, wt, bt = res
    dxc = _pallas_head_bwd(xc, ws, bs, wt, bt, demb)
    # parameter cotangents in plain JAX (DCE'd: only adj is differentiated)
    B, N, Dc = xc.shape
    H = ws.shape[1]
    xf = xc.reshape(B * N, Dc)
    sg = jax.nn.sigmoid(xf @ ws + bs).reshape(B, N, H)
    th = jnp.tanh(xf @ wt + bt).reshape(B, N, H)
    emb = jnp.tanh(jnp.sum(sg * th, axis=1))
    dsum = (demb * (1.0 - emb * emb))[:, None, :]
    du1 = (dsum * th * sg * (1.0 - sg)).reshape(B * N, H)
    du2 = (dsum * sg * (1.0 - th * th)).reshape(B * N, H)
    dws = xf.T @ du1
    dbs = jnp.sum(du1, axis=0)
    dwt = xf.T @ du2
    dbt = jnp.sum(du2, axis=0)
    return dxc, dws, dbs, dwt, dbt


gated_head.defvjp(_gated_head_fwd_rule, _gated_head_bwd_rule)


# -------------------------------- mask_adjs ---------------------------------

def _mask_adjs_kernel(adj_ref, flags_ref, o_ref):
    f = flags_ref[...]
    o_ref[...] = adj_ref[...] * f[:, :, None] * f[:, None, :]


def pallas_mask_adjs(adjs, flags):
    """mask_adjs: adjs * flags[...,None] * flags[...,None,:] — single launch."""
    B, N, _ = adjs.shape
    return pl.pallas_call(
        _mask_adjs_kernel,
        out_shape=jax.ShapeDtypeStruct((B, N, N), jnp.float32),
        grid=(1,),
        in_specs=[_fullspec((B, N, N)), _fullspec((B, N))],
        out_specs=_fullspec((B, N, N)),
    )(adjs, flags)


# --------------------------- model (glue in JAX) ----------------------------

def regressor_forward(params, x, adj, flags):
    xs = [x]
    out = x
    for (wl, bl), (wc, bc) in zip(params["linears"], params["convs"]):
        out = gcn_layer(out, adj, flags, wl, bl, wc, bc)   # fused Pallas layer
        xs.append(out)
    out_cat = jnp.concatenate(xs, axis=-1)                  # (B, N, F + depth*H)
    ws, bs = params["sigmoid_linear"]
    wt, bt = params["tanh_linear"]
    embeds = gated_head(out_cat, ws, bs, wt, bt)            # fused Pallas head
    # final tiny MLP (2-lane output): left to XLA — launch overhead would
    # dominate any Pallas version at this size.
    w1, b1 = params["final1"]
    w2, b2 = params["final2"]
    h1 = jnp.maximum(embeds @ w1 + b1, 0.0)
    # TODO(synk): torch.nn.Dropout treated as identity (eval-mode semantics).
    preds = h1 @ w2 + b2
    preds = preds.at[:, 0].set(jax.nn.sigmoid(preds[:, 0]))
    return preds, embeds


def regressor_score_adj(params, x, adj, flags, t):
    """RegressorScoreAdj.forward: mask_adjs(d sum(preds) / d adj, flags)."""
    del t  # the regressor_fn ignores t (matches the reference)

    def scalar_objective(adj_para):
        preds, _embeds = regressor_forward(params, x, adj_para, flags)
        return jnp.sum(preds)

    score = jax.grad(scalar_objective)(adj)
    return pallas_mask_adjs(score, flags)


# ----------------------- deterministic parameter init -----------------------

def init_params(key, max_feat_num, nhid, depth):
    def lin_init(k, din, dout):
        k1, k2 = jax.random.split(k)
        bound = 1.0 / jnp.sqrt(jnp.float32(din))
        W = jax.random.uniform(k1, (din, dout), jnp.float32, -bound, bound)
        b = jax.random.uniform(k2, (dout,), jnp.float32, -bound, bound)
        return W, b

    keys = jax.random.split(key, 2 * depth + 4)
    linears, convs = [], []
    din = max_feat_num
    for d in range(depth):
        linears.append(lin_init(keys[2 * d], din, nhid))
        convs.append(lin_init(keys[2 * d + 1], nhid, nhid))
        din = nhid
    dim = max_feat_num + depth * nhid
    return {
        "linears": linears,
        "convs": convs,
        "sigmoid_linear": lin_init(keys[2 * depth], dim, nhid),
        "tanh_linear": lin_init(keys[2 * depth + 1], dim, nhid),
        "final1": lin_init(keys[2 * depth + 2], nhid, nhid),
        "final2": lin_init(keys[2 * depth + 3], nhid, 2),
    }


# ------------------ pure-JAX reference (for verification) -------------------

def reference_score(params, x, adj, flags):
    def layer(xin, adjm, wl, bl, wc, bc):
        B, N, Din = xin.shape
        H = wl.shape[1]
        eye = jnp.eye(N, dtype=jnp.float32)
        a = adjm * (1.0 - eye) + eye
        s = lax.rsqrt(jnp.maximum(jnp.sum(a, axis=-1), 1.0))
        an = a * s[:, :, None] * s[:, None, :]
        g = ((xin.reshape(B * N, Din) @ wl + bl) @ wc).reshape(B, N, H)
        z = jnp.einsum('bij,bjh->bih', an, g) + bc
        return jnp.tanh(z) * flags[:, :, None]

    def scalar_objective(adjm):
        xs = [x]
        out = x
        for (wl, bl), (wc, bc) in zip(params["linears"], params["convs"]):
            out = layer(out, adjm, wl, bl, wc, bc)
            xs.append(out)
        oc = jnp.concatenate(xs, axis=-1)
        B, N, Dc = oc.shape
        ws, bs = params["sigmoid_linear"]
        wt, bt = params["tanh_linear"]
        of = oc.reshape(B * N, Dc)
        prod = jax.nn.sigmoid(of @ ws + bs) * jnp.tanh(of @ wt + bt)
        emb = jnp.tanh(jnp.sum(prod.reshape(B, N, -1), axis=1))
        w1, b1 = params["final1"]
        w2, b2 = params["final2"]
        h1 = jnp.maximum(emb @ w1 + b1, 0.0)
        p = h1 @ w2 + b2
        p = p.at[:, 0].set(jax.nn.sigmoid(p[:, 0]))
        return jnp.sum(p)

    g = jax.grad(scalar_objective)(adj)
    return g * flags[:, :, None] * flags[:, None, :]


# ----------------------------------- main ------------------------------------

if __name__ == "__main__":
    B, N, F, H, depth = 2, 8, 4, 32, 2

    key = jax.random.PRNGKey(0)
    kx, ka, kf, kp = jax.random.split(key, 4)
    x = jax.random.normal(kx, (B, N, F), jnp.float32)
    adj = jax.random.uniform(ka, (B, N, N), jnp.float32)
    adj = 0.5 * (adj + jnp.swapaxes(adj, -1, -2))     # symmetric adjacency
    flags = (jax.random.uniform(kf, (B, N)) > 0.2).astype(jnp.float32)
    t = jnp.float32(0.5)

    params = init_params(kp, F, H, depth)

    score_fn = jax.jit(regressor_score_adj)
    score = jax.block_until_ready(score_fn(params, x, adj, flags, t))

    assert score.shape == (B, N, N), score.shape
    assert bool(jnp.all(jnp.isfinite(score)))

    # Validate the Pallas forward + hand-written Pallas VJPs against pure-JAX
    # autodiff of an identical jnp model (loose tol covers MXU f32 rounding).
    ref = jax.block_until_ready(reference_score(params, x, adj, flags))
    np.testing.assert_allclose(np.asarray(score), np.asarray(ref),
                               rtol=5e-2, atol=1e-3)

    print("KERNEL_OK")
</pallas_src>

<mosaic_0001>
module attributes {stable_mosaic.version = 11 : i64} {
  func.func @_gcn_layer_fwd_kernel(%arg0: i32, %arg1: memref<2x8x4xf32, #tpu.memory_space<vmem>>, %arg2: memref<2x8x8xf32, #tpu.memory_space<vmem>>, %arg3: memref<2x8xf32, #tpu.memory_space<vmem>>, %arg4: memref<4x32xf32, #tpu.memory_space<vmem>>, %arg5: memref<1x32xf32, #tpu.memory_space<vmem>>, %arg6: memref<32x32xf32, #tpu.memory_space<vmem>>, %arg7: memref<1x32xf32, #tpu.memory_space<vmem>>, %arg8: memref<2x8x32xf32, #tpu.memory_space<vmem>>) attributes {dimension_semantics = [#tpu.dimension_semantics<arbitrary>], iteration_bounds = array<i64: 1>, scalar_prefetch = 0 : i64, scratch_operands = 0 : i64, tpu.core_type = #tpu.core_type<tc>, window_params = [{pipeline_mode = #tpu.pipeline_mode<synchronous>, transform_indices = @transform_0, window_bounds = array<i64: 2, 8, 4>}, {pipeline_mode = #tpu.pipeline_mode<synchronous>, transform_indices = @transform_1, window_bounds = array<i64: 2, 8, 8>}, {pipeline_mode = #tpu.pipeline_mode<synchronous>, transform_indices = @transform_2, window_bounds = array<i64: 2, 8>}, {pipeline_mode = #tpu.pipeline_mode<synchronous>, transform_indices = @transform_3, window_bounds = array<i64: 4, 32>}, {pipeline_mode = #tpu.pipeline_mode<synchronous>, transform_indices = @transform_4, window_bounds = array<i64: 1, 32>}, {pipeline_mode = #tpu.pipeline_mode<synchronous>, transform_indices = @transform_5, window_bounds = array<i64: 32, 32>}, {pipeline_mode = #tpu.pipeline_mode<synchronous>, transform_indices = @transform_6, window_bounds = array<i64: 1, 32>}, {pipeline_mode = #tpu.pipeline_mode<synchronous>, transform_indices = @transform_7, window_bounds = array<i64: 2, 8, 32>}]} {
    %c0 = arith.constant 0 : index
    %c0_0 = arith.constant 0 : index
    %c0_1 = arith.constant 0 : index
    %0 = vector.load %arg1[%c0, %c0_0, %c0_1] : memref<2x8x4xf32, #tpu.memory_space<vmem>>, vector<2x8x4xf32>
    %1 = vector.shape_cast %0 : vector<2x8x4xf32> to vector<16x4xf32>
    %c0_2 = arith.constant 0 : index
    %c0_3 = arith.constant 0 : index
    %2 = vector.load %arg4[%c0_2, %c0_3] : memref<4x32xf32, #tpu.memory_space<vmem>>, vector<4x32xf32>
    %cst = arith.constant dense<0.000000e+00> : vector<16x32xf32>
    %3 = tpu.matmul %1, %2, %cst {dimension_numbers = #tpu.dot_dimension_numbers<[1], [0], [0], [1], [0, 0, 1, 1], [], []>} : vector<16x4xf32>, vector<4x32xf32>, vector<16x32xf32> -> vector<16x32xf32>
    %c0_4 = arith.constant 0 : index
    %c0_5 = arith.constant 0 : index
    %4 = vector.load %arg5[%c0_4, %c0_5] : memref<1x32xf32, #tpu.memory_space<vmem>>, vector<1x32xf32>
    %5 = vector.broadcast %4 : vector<1x32xf32> to vector<16x32xf32>
    %6 = arith.addf %3, %5 : vector<16x32xf32>
    %c0_6 = arith.constant 0 : index
    %c0_7 = arith.constant 0 : index
    %7 = vector.load %arg6[%c0_6, %c0_7] : memref<32x32xf32, #tpu.memory_space<vmem>>, vector<32x32xf32>
    %cst_8 = arith.constant dense<0.000000e+00> : vector<16x32xf32>
    %8 = tpu.matmul %6, %7, %cst_8 {dimension_numbers = #tpu.dot_dimension_numbers<[1], [0], [0], [1], [0, 0, 1, 1], [], []>} : vector<16x32xf32>, vector<32x32xf32>, vector<16x32xf32> -> vector<16x32xf32>
    %9 = vector.shape_cast %8 : vector<16x32xf32> to vector<2x8x32xf32>
    %10 = tpu.iota {dimensions = array<i32: 0>} : vector<8x8xi32>
    %11 = tpu.iota {dimensions = array<i32: 1>} : vector<8x8xi32>
    %12 = arith.cmpi eq, %10, %11 : vector<8x8xi32>
    %13 = arith.extui %12 : vector<8x8xi1> to vector<8x8xi32>
    %14 = arith.sitofp %13 : vector<8x8xi32> to vector<8x8xf32>
    %c0_9 = arith.constant 0 : index
    %c0_10 = arith.constant 0 : index
    %c0_11 = arith.constant 0 : index
    %15 = vector.load %arg2[%c0_9, %c0_10, %c0_11] : memref<2x8x8xf32, #tpu.memory_space<vmem>>, vector<2x8x8xf32>
    %cst_12 = arith.constant 1.000000e+00 : f32
    %16 = vector.broadcast %cst_12 : f32 to vector<8x8xf32>
    %17 = arith.subf %16, %14 : vector<8x8xf32>
    %18 = vector.shape_cast %17 : vector<8x8xf32> to vector<1x8x8xf32>
    %19 = vector.broadcast %18 : vector<1x8x8xf32> to vector<2x8x8xf32>
    %20 = arith.mulf %15, %19 : vector<2x8x8xf32>
    %21 = vector.shape_cast %14 : vector<8x8xf32> to vector<1x8x8xf32>
    %22 = vector.broadcast %21 : vector<1x8x8xf32> to vector<2x8x8xf32>
    %23 = arith.addf %20, %22 : vector<2x8x8xf32>
    %cst_13 = arith.constant dense<0.000000e+00> : vector<2x8xf32>
    %24 = vector.multi_reduction <add>, %23, %cst_13 [2] : vector<2x8x8xf32> to vector<2x8xf32>
    %cst_14 = arith.constant 1.000000e+00 : f32
    %25 = vector.broadcast %cst_14 : f32 to vector<2x8xf32>
    %26 = arith.maximumf %24, %25 : vector<2x8xf32>
    %27 = math.rsqrt %26 : vector<2x8xf32>
    %28 = vector.shape_cast %27 : vector<2x8xf32> to vector<2x8x1xf32>
    %29 = vector.broadcast %28 : vector<2x8x1xf32> to vector<2x8x8xf32>
    %30 = arith.mulf %23, %29 : vector<2x8x8xf32>
    %31 = vector.shape_cast %27 : vector<2x8xf32> to vector<2x1x8xf32>
    %32 = vector.broadcast %31 : vector<2x1x8xf32> to vector<2x8x8xf32>
    %33 = arith.mulf %30, %32 : vector<2x8x8xf32>
    "tpu.trace_start"() <{level = 10 : i32, message = "bij,bjh->bih"}> : () -> ()
    %cst_15 = arith.constant dense<0.000000e+00> : vector<2x8x32xf32>
    %34 = tpu.matmul %33, %9, %cst_15 {dimension_numbers = #tpu.dot_dimension_numbers<[2], [1], [1], [2], [0, 0, 0, 1, 1, 2], [0], [0]>} : vector<2x8x8xf32>, vector<2x8x32xf32>, vector<2x8x32xf32> -> vector<2x8x32xf32>
    "tpu.trace_stop"() : () -> ()
    %c0_16 = arith.constant 0 : index
    %c0_17 = arith.constant 0 : index
    %35 = vector.load %arg7[%c0_16, %c0_17] : memref<1x32xf32, #tpu.memory_space<vmem>>, vector<1x32xf32>
    %36 = vector.shape_cast %35 : vector<1x32xf32> to vector<1x1x32xf32>
    %37 = vector.broadcast %36 : vector<1x1x32xf32> to vector<2x8x32xf32>
    %38 = arith.addf %34, %37 : vector<2x8x32xf32>
    %39 = math.tanh %38 : vector<2x8x32xf32>
    %c0_18 = arith.constant 0 : index
    %c0_19 = arith.constant 0 : index
    %40 = vector.load %arg3[%c0_18, %c0_19] : memref<2x8xf32, #tpu.memory_space<vmem>>, vector<2x8xf32>
    %41 = vector.shape_cast %40 : vector<2x8xf32> to vector<2x8x1xf32>
    %42 = vector.broadcast %41 : vector<2x8x1xf32> to vector<2x8x32xf32>
    %43 = arith.mulf %39, %42 : vector<2x8x32xf32>
    %c0_20 = arith.constant 0 : index
    %c0_21 = arith.constant 0 : index
    %c0_22 = arith.constant 0 : index
    %44 = vector.load %arg8[%c0_20, %c0_21, %c0_22] : memref<2x8x32xf32, #tpu.memory_space<vmem>>, vector<2x8x32xf32>
    tpu.vector_store %arg8[%c0_20, %c0_21, %c0_22], %43 {strides = array<i32>} : memref<2x8x32xf32, #tpu.memory_space<vmem>>, vector<2x8x32xf32>,
    return
  }
  func.func @transform_0(%arg0: i32) -> (i32, i32, i32) {
    %c0_i32 = arith.constant 0 : i32
    %c0_i32_0 = arith.constant 0 : i32
    %c0_i32_1 = arith.constant 0 : i32
    %c0_i32_2 = arith.constant 0 : i32
    return %c0_i32, %c0_i32_0, %c0_i32_1 : i32, i32, i32
  }
  func.func @transform_1(%arg0: i32) -> (i32, i32, i32) {
    %c0_i32 = arith.constant 0 : i32
    %c0_i32_0 = arith.constant 0 : i32
    %c0_i32_1 = arith.constant 0 : i32
    %c0_i32_2 = arith.constant 0 : i32
    return %c0_i32, %c0_i32_0, %c0_i32_1 : i32, i32, i32
  }
  func.func @transform_2(%arg0: i32) -> (i32, i32) {
    %c0_i32 = arith.constant 0 : i32
    %c0_i32_0 = arith.constant 0 : i32
    %c0_i32_1 = arith.constant 0 : i32
    return %c0_i32, %c0_i32_0 : i32, i32
  }
  func.func @transform_3(%arg0: i32) -> (i32, i32) {
    %c0_i32 = arith.constant 0 : i32
    %c0_i32_0 = arith.constant 0 : i32
    %c0_i32_1 = arith.constant 0 : i32
    return %c0_i32, %c0_i32_0 : i32, i32
  }
  func.func @transform_4(%arg0: i32) -> (i32, i32) {
    %c0_i32 = arith.constant 0 : i32
    %c0_i32_0 = arith.constant 0 : i32
    %c0_i32_1 = arith.constant 0 : i32
    return %c0_i32, %c0_i32_0 : i32, i32
  }
  func.func @transform_5(%arg0: i32) -> (i32, i32) {
    %c0_i32 = arith.constant 0 : i32
    %c0_i32_0 = arith.constant 0 : i32
    %c0_i32_1 = arith.constant 0 : i32
    return %c0_i32, %c0_i32_0 : i32, i32
  }
  func.func @transform_6(%arg0: i32) -> (i32, i32) {
    %c0_i32 = arith.constant 0 : i32
    %c0_i32_0 = arith.constant 0 : i32
    %c0_i32_1 = arith.constant 0 : i32
    return %c0_i32, %c0_i32_0 : i32, i32
  }
  func.func @transform_7(%arg0: i32) -> (i32, i32, i32) {
    %c0_i32 = arith.constant 0 : i32
    %c0_i32_0 = arith.constant 0 : i32
    %c0_i32_1 = arith.constant 0 : i32
    %c0_i32_2 = arith.constant 0 : i32
    return %c0_i32, %c0_i32_0, %c0_i32_1 : i32, i32, i32
  }
}

module attributes {stable_mosaic.version = 11 : i64} {
  func.func @_gcn_layer_fwd_kernel(%arg0: i32, %arg1: memref<2x8x32xf32, #tpu.memory_space<vmem>>, %arg2: memref<2x8x8xf32, #tpu.memory_space<vmem>>, %arg3: memref<2x8xf32, #tpu.memory_space<vmem>>, %arg4: memref<32x32xf32, #tpu.memory_space<vmem>>, %arg5: memref<1x32xf32, #tpu.memory_space<vmem>>, %arg6: memref<32x32xf32, #tpu.memory_space<vmem>>, %arg7: memref<1x32xf32, #tpu.memory_space<vmem>>, %arg8: memref<2x8x32xf32, #tpu.memory_space<vmem>>) attributes {dimension_semantics = [#tpu.dimension_semantics<arbitrary>], iteration_bounds = array<i64: 1>, scalar_prefetch = 0 : i64, scratch_operands = 0 : i64, tpu.core_type = #tpu.core_type<tc>, window_params = [{pipeline_mode = #tpu.pipeline_mode<synchronous>, transform_indices = @transform_0, window_bounds = array<i64: 2, 8, 32>}, {pipeline_mode = #tpu.pipeline_mode<synchronous>, transform_indices = @transform_1, window_bounds = array<i64: 2, 8, 8>}, {pipeline_mode = #tpu.pipeline_mode<synchronous>, transform_indices = @transform_2, window_bounds = array<i64: 2, 8>}, {pipeline_mode = #tpu.pipeline_mode<synchronous>, transform_indices = @transform_3, window_bounds = array<i64: 32, 32>}, {pipeline_mode = #tpu.pipeline_mode<synchronous>, transform_indices = @transform_4, window_bounds = array<i64: 1, 32>}, {pipeline_mode = #tpu.pipeline_mode<synchronous>, transform_indices = @transform_5, window_bounds = array<i64: 32, 32>}, {pipeline_mode = #tpu.pipeline_mode<synchronous>, transform_indices = @transform_6, window_bounds = array<i64: 1, 32>}, {pipeline_mode = #tpu.pipeline_mode<synchronous>, transform_indices = @transform_7, window_bounds = array<i64: 2, 8, 32>}]} {
    %c0 = arith.constant 0 : index
    %c0_0 = arith.constant 0 : index
    %c0_1 = arith.constant 0 : index
    %0 = vector.load %arg1[%c0, %c0_0, %c0_1] : memref<2x8x32xf32, #tpu.memory_space<vmem>>, vector<2x8x32xf32>
    %1 = vector.shape_cast %0 : vector<2x8x32xf32> to vector<16x32xf32>
    %c0_2 = arith.constant 0 : index
    %c0_3 = arith.constant 0 : index
    %2 = vector.load %arg4[%c0_2, %c0_3] : memref<32x32xf32, #tpu.memory_space<vmem>>, vector<32x32xf32>
    %cst = arith.constant dense<0.000000e+00> : vector<16x32xf32>
    %3 = tpu.matmul %1, %2, %cst {dimension_numbers = #tpu.dot_dimension_numbers<[1], [0], [0], [1], [0, 0, 1, 1], [], []>} : vector<16x32xf32>, vector<32x32xf32>, vector<16x32xf32> -> vector<16x32xf32>
    %c0_4 = arith.constant 0 : index
    %c0_5 = arith.constant 0 : index
    %4 = vector.load %arg5[%c0_4, %c0_5] : memref<1x32xf32, #tpu.memory_space<vmem>>, vector<1x32xf32>
    %5 = vector.broadcast %4 : vector<1x32xf32> to vector<16x32xf32>
    %6 = arith.addf %3, %5 : vector<16x32xf32>
    %c0_6 = arith.constant 0 : index
    %c0_7 = arith.constant 0 : index
    %7 = vector.load %arg6[%c0_6, %c0_7] : memref<32x32xf32, #tpu.memory_space<vmem>>, vector<32x32xf32>
    %cst_8 = arith.constant dense<0.000000e+00> : vector<16x32xf32>
    %8 = tpu.matmul %6, %7, %cst_8 {dimension_numbers = #tpu.dot_dimension_numbers<[1], [0], [0], [1], [0, 0, 1, 1], [], []>} : vector<16x32xf32>, vector<32x32xf32>, vector<16x32xf32> -> vector<16x32xf32>
    %9 = vector.shape_cast %8 : vector<16x32xf32> to vector<2x8x32xf32>
    %10 = tpu.iota {dimensions = array<i32: 0>} : vector<8x8xi32>
    %11 = tpu.iota {dimensions = array<i32: 1>} : vector<8x8xi32>
    %12 = arith.cmpi eq, %10, %11 : vector<8x8xi32>
    %13 = arith.extui %12 : vector<8x8xi1> to vector<8x8xi32>
    %14 = arith.sitofp %13 : vector<8x8xi32> to vector<8x8xf32>
    %c0_9 = arith.constant 0 : index
    %c0_10 = arith.constant 0 : index
    %c0_11 = arith.constant 0 : index
    %15 = vector.load %arg2[%c0_9, %c0_10, %c0_11] : memref<2x8x8xf32, #tpu.memory_space<vmem>>, vector<2x8x8xf32>
    %cst_12 = arith.constant 1.000000e+00 : f32
    %16 = vector.broadcast %cst_12 : f32 to vector<8x8xf32>
    %17 = arith.subf %16, %14 : vector<8x8xf32>
    %18 = vector.shape_cast %17 : vector<8x8xf32> to vector<1x8x8xf32>
    %19 = vector.broadcast %18 : vector<1x8x8xf32> to vector<2x8x8xf32>
    %20 = arith.mulf %15, %19 : vector<2x8x8xf32>
    %21 = vector.shape_cast %14 : vector<8x8xf32> to vector<1x8x8xf32>
    %22 = vector.broadcast %21 : vector<1x8x8xf32> to vector<2x8x8xf32>
    %23 = arith.addf %20, %22 : vector<2x8x8xf32>
    %cst_13 = arith.constant dense<0.000000e+00> : vector<2x8xf32>
    %24 = vector.multi_reduction <add>, %23, %cst_13 [2] : vector<2x8x8xf32> to vector<2x8xf32>
    %cst_14 = arith.constant 1.000000e+00 : f32
    %25 = vector.broadcast %cst_14 : f32 to vector<2x8xf32>
    %26 = arith.maximumf %24, %25 : vector<2x8xf32>
    %27 = math.rsqrt %26 : vector<2x8xf32>
    %28 = vector.shape_cast %27 : vector<2x8xf32> to vector<2x8x1xf32>
    %29 = vector.broadcast %28 : vector<2x8x1xf32> to vector<2x8x8xf32>
    %30 = arith.mulf %23, %29 : vector<2x8x8xf32>
    %31 = vector.shape_cast %27 : vector<2x8xf32> to vector<2x1x8xf32>
    %32 = vector.broadcast %31 : vector<2x1x8xf32> to vector<2x8x8xf32>
    %33 = arith.mulf %30, %32 : vector<2x8x8xf32>
    "tpu.trace_start"() <{level = 10 : i32, message = "bij,bjh->bih"}> : () -> ()
    %cst_15 = arith.constant dense<0.000000e+00> : vector<2x8x32xf32>
    %34 = tpu.matmul %33, %9, %cst_15 {dimension_numbers = #tpu.dot_dimension_numbers<[2], [1], [1], [2], [0, 0, 0, 1, 1, 2], [0], [0]>} : vector<2x8x8xf32>, vector<2x8x32xf32>, vector<2x8x32xf32> -> vector<2x8x32xf32>
    "tpu.trace_stop"() : () -> ()
    %c0_16 = arith.constant 0 : index
    %c0_17 = arith.constant 0 : index
    %35 = vector.load %arg7[%c0_16, %c0_17] : memref<1x32xf32, #tpu.memory_space<vmem>>, vector<1x32xf32>
    %36 = vector.shape_cast %35 : vector<1x32xf32> to vector<1x1x32xf32>
    %37 = vector.broadcast %36 : vector<1x1x32xf32> to vector<2x8x32xf32>
    %38 = arith.addf %34, %37 : vector<2x8x32xf32>
    %39 = math.tanh %38 : vector<2x8x32xf32>
    %c0_18 = arith.constant 0 : index
    %c0_19 = arith.constant 0 : index
    %40 = vector.load %arg3[%c0_18, %c0_19] : memref<2x8xf32, #tpu.memory_space<vmem>>, vector<2x8xf32>
    %41 = vector.shape_cast %40 : vector<2x8xf32> to vector<2x8x1xf32>
    %42 = vector.broadcast %41 : vector<2x8x1xf32> to vector<2x8x32xf32>
    %43 = arith.mulf %39, %42 : vector<2x8x32xf32>
    %c0_20 = arith.constant 0 : index
    %c0_21 = arith.constant 0 : index
    %c0_22 = arith.constant 0 : index
    %44 = vector.load %arg8[%c0_20, %c0_21, %c0_22] : memref<2x8x32xf32, #tpu.memory_space<vmem>>, vector<2x8x32xf32>
    tpu.vector_store %arg8[%c0_20, %c0_21, %c0_22], %43 {strides = array<i32>} : memref<2x8x32xf32, #tpu.memory_space<vmem>>, vector<2x8x32xf32>,
    return
  }
  func.func @transform_0(%arg0: i32) -> (i32, i32, i32) {
    %c0_i32 = arith.constant 0 : i32
    %c0_i32_0 = arith.constant 0 : i32
    %c0_i32_1 = arith.constant 0 : i32
    %c0_i32_2 = arith.constant 0 : i32
    return %c0_i32, %c0_i32_0, %c0_i32_1 : i32, i32, i32
  }
  func.func @transform_1(%arg0: i32) -> (i32, i32, i32) {
    %c0_i32 = arith.constant 0 : i32
    %c0_i32_0 = arith.constant 0 : i32
    %c0_i32_1 = arith.constant 0 : i32
    %c0_i32_2 = arith.constant 0 : i32
    return %c0_i32, %c0_i32_0, %c0_i32_1 : i32, i32, i32
  }
  func.func @transform_2(%arg0: i32) -> (i32, i32) {
    %c0_i32 = arith.constant 0 : i32
    %c0_i32_0 = arith.constant 0 : i32
    %c0_i32_1 = arith.constant 0 : i32
    return %c0_i32, %c0_i32_0 : i32, i32
  }
  func.func @transform_3(%arg0: i32) -> (i32, i32) {
    %c0_i32 = arith.constant 0 : i32
    %c0_i32_0 = arith.constant 0 : i32
    %c0_i32_1 = arith.constant 0 : i32
    return %c0_i32, %c0_i32_0 : i32, i32
  }
  func.func @transform_4(%arg0: i32) -> (i32, i32) {
    %c0_i32 = arith.constant 0 : i32
    %c0_i32_0 = arith.constant 0 : i32
    %c0_i32_1 = arith.constant 0 : i32
    return %c0_i32, %c0_i32_0 : i32, i32
  }
  func.func @transform_5(%arg0: i32) -> (i32, i32) {
    %c0_i32 = arith.constant 0 : i32
    %c0_i32_0 = arith.constant 0 : i32
    %c0_i32_1 = arith.constant 0 : i32
    return %c0_i32, %c0_i32_0 : i32, i32
  }
  func.func @transform_6(%arg0: i32) -> (i32, i32) {
    %c0_i32 = arith.constant 0 : i32
    %c0_i32_0 = arith.constant 0 : i32
    %c0_i32_1 = arith.constant 0 : i32
    return %c0_i32, %c0_i32_0 : i32, i32
  }
  func.func @transform_7(%arg0: i32) -> (i32, i32, i32) {
    %c0_i32 = arith.constant 0 : i32
    %c0_i32_0 = arith.constant 0 : i32
    %c0_i32_1 = arith.constant 0 : i32
    %c0_i32_2 = arith.constant 0 : i32
    return %c0_i32, %c0_i32_0, %c0_i32_1 : i32, i32, i32
  }
}

module attributes {stable_mosaic.version = 11 : i64} {
  func.func @_head_fwd_kernel(%arg0: i32, %arg1: memref<2x8x68xf32, #tpu.memory_space<vmem>>, %arg2: memref<68x32xf32, #tpu.memory_space<vmem>>, %arg3: memref<1x32xf32, #tpu.memory_space<vmem>>, %arg4: memref<68x32xf32, #tpu.memory_space<vmem>>, %arg5: memref<1x32xf32, #tpu.memory_space<vmem>>, %arg6: memref<2x32xf32, #tpu.memory_space<vmem>>) attributes {dimension_semantics = [#tpu.dimension_semantics<arbitrary>], iteration_bounds = array<i64: 1>, scalar_prefetch = 0 : i64, scratch_operands = 0 : i64, tpu.core_type = #tpu.core_type<tc>, window_params = [{pipeline_mode = #tpu.pipeline_mode<synchronous>, transform_indices = @transform_0, window_bounds = array<i64: 2, 8, 68>}, {pipeline_mode = #tpu.pipeline_mode<synchronous>, transform_indices = @transform_1, window_bounds = array<i64: 68, 32>}, {pipeline_mode = #tpu.pipeline_mode<synchronous>, transform_indices = @transform_2, window_bounds = array<i64: 1, 32>}, {pipeline_mode = #tpu.pipeline_mode<synchronous>, transform_indices = @transform_3, window_bounds = array<i64: 68, 32>}, {pipeline_mode = #tpu.pipeline_mode<synchronous>, transform_indices = @transform_4, window_bounds = array<i64: 1, 32>}, {pipeline_mode = #tpu.pipeline_mode<synchronous>, transform_indices = @transform_5, window_bounds = array<i64: 2, 32>}]} {
    %c0 = arith.constant 0 : index
    %c0_0 = arith.constant 0 : index
    %c0_1 = arith.constant 0 : index
    %0 = vector.load %arg1[%c0, %c0_0, %c0_1] : memref<2x8x68xf32, #tpu.memory_space<vmem>>, vector<2x8x68xf32>
    %1 = vector.shape_cast %0 : vector<2x8x68xf32> to vector<16x68xf32>
    %c0_2 = arith.constant 0 : index
    %c0_3 = arith.constant 0 : index
    %2 = vector.load %arg2[%c0_2, %c0_3] : memref<68x32xf32, #tpu.memory_space<vmem>>, vector<68x32xf32>
    %cst = arith.constant dense<0.000000e+00> : vector<16x32xf32>
    %3 = tpu.matmul %1, %2, %cst {dimension_numbers = #tpu.dot_dimension_numbers<[1], [0], [0], [1], [0, 0, 1, 1], [], []>} : vector<16x68xf32>, vector<68x32xf32>, vector<16x32xf32> -> vector<16x32xf32>
    %c0_4 = arith.constant 0 : index
    %c0_5 = arith.constant 0 : index
    %4 = vector.load %arg3[%c0_4, %c0_5] : memref<1x32xf32, #tpu.memory_space<vmem>>, vector<1x32xf32>
    %5 = vector.broadcast %4 : vector<1x32xf32> to vector<16x32xf32>
    %6 = arith.addf %3, %5 : vector<16x32xf32>
    %c0_6 = arith.constant 0 : index
    %c0_7 = arith.constant 0 : index
    %7 = vector.load %arg4[%c0_6, %c0_7] : memref<68x32xf32, #tpu.memory_space<vmem>>, vector<68x32xf32>
    %cst_8 = arith.constant dense<0.000000e+00> : vector<16x32xf32>
    %8 = tpu.matmul %1, %7, %cst_8 {dimension_numbers = #tpu.dot_dimension_numbers<[1], [0], [0], [1], [0, 0, 1, 1], [], []>} : vector<16x68xf32>, vector<68x32xf32>, vector<16x32xf32> -> vector<16x32xf32>
    %c0_9 = arith.constant 0 : index
    %c0_10 = arith.constant 0 : index
    %9 = vector.load %arg5[%c0_9, %c0_10] : memref<1x32xf32, #tpu.memory_space<vmem>>, vector<1x32xf32>
    %10 = vector.broadcast %9 : vector<1x32xf32> to vector<16x32xf32>
    %11 = arith.addf %8, %10 : vector<16x32xf32>
    %cst_11 = arith.constant 0.000000e+00 : f32
    %12 = vector.broadcast %cst_11 : f32 to vector<16x32xf32>
    %13 = arith.subf %12, %6 : vector<16x32xf32>
    %14 = math.exp %13 : vector<16x32xf32>
    %cst_12 = arith.constant 1.000000e+00 : f32
    %15 = vector.broadcast %cst_12 : f32 to vector<16x32xf32>
    %16 = arith.addf %15, %14 : vector<16x32xf32>
    %cst_13 = arith.constant 1.000000e+00 : f32
    %17 = vector.broadcast %cst_13 : f32 to vector<16x32xf32>
    %18 = arith.divf %17, %16 : vector<16x32xf32>
    %19 = math.tanh %11 : vector<16x32xf32>
    %20 = arith.mulf %18, %19 : vector<16x32xf32>
    %21 = vector.shape_cast %20 : vector<16x32xf32> to vector<2x8x32xf32>
    %cst_14 = arith.constant dense<0.000000e+00> : vector<2x32xf32>
    %22 = vector.multi_reduction <add>, %21, %cst_14 [1] : vector<2x8x32xf32> to vector<2x32xf32>
    %23 = math.tanh %22 : vector<2x32xf32>
    %c0_15 = arith.constant 0 : index
    %c0_16 = arith.constant 0 : index
    %24 = vector.load %arg6[%c0_15, %c0_16] : memref<2x32xf32, #tpu.memory_space<vmem>>, vector<2x32xf32>
    tpu.vector_store %arg6[%c0_15, %c0_16], %23 {strides = array<i32>} : memref<2x32xf32, #tpu.memory_space<vmem>>, vector<2x32xf32>,
    return
  }
  func.func @transform_0(%arg0: i32) -> (i32, i32, i32) {
    %c0_i32 = arith.constant 0 : i32
    %c0_i32_0 = arith.constant 0 : i32
    %c0_i32_1 = arith.constant 0 : i32
    %c0_i32_2 = arith.constant 0 : i32
    return %c0_i32, %c0_i32_0, %c0_i32_1 : i32, i32, i32
  }
  func.func @transform_1(%arg0: i32) -> (i32, i32) {
    %c0_i32 = arith.constant 0 : i32
    %c0_i32_0 = arith.constant 0 : i32
    %c0_i32_1 = arith.constant 0 : i32
    return %c0_i32, %c0_i32_0 : i32, i32
  }
  func.func @transform_2(%arg0: i32) -> (i32, i32) {
    %c0_i32 = arith.constant 0 : i32
    %c0_i32_0 = arith.constant 0 : i32
    %c0_i32_1 = arith.constant 0 : i32
    return %c0_i32, %c0_i32_0 : i32, i32
  }
  func.func @transform_3(%arg0: i32) -> (i32, i32) {
    %c0_i32 = arith.constant 0 : i32
    %c0_i32_0 = arith.constant 0 : i32
    %c0_i32_1 = arith.constant 0 : i32
    return %c0_i32, %c0_i32_0 : i32, i32
  }
  func.func @transform_4(%arg0: i32) -> (i32, i32) {
    %c0_i32 = arith.constant 0 : i32
    %c0_i32_0 = arith.constant 0 : i32
    %c0_i32_1 = arith.constant 0 : i32
    return %c0_i32, %c0_i32_0 : i32, i32
  }
  func.func @transform_5(%arg0: i32) -> (i32, i32) {
    %c0_i32 = arith.constant 0 : i32
    %c0_i32_0 = arith.constant 0 : i32
    %c0_i32_1 = arith.constant 0 : i32
    return %c0_i32, %c0_i32_0 : i32, i32
  }
}

module attributes {stable_mosaic.version = 11 : i64} {
  func.func @_head_bwd_kernel(%arg0: i32, %arg1: memref<2x8x68xf32, #tpu.memory_space<vmem>>, %arg2: memref<68x32xf32, #tpu.memory_space<vmem>>, %arg3: memref<1x32xf32, #tpu.memory_space<vmem>>, %arg4: memref<68x32xf32, #tpu.memory_space<vmem>>, %arg5: memref<1x32xf32, #tpu.memory_space<vmem>>, %arg6: memref<2x32xf32, #tpu.memory_space<vmem>>, %arg7: memref<2x8x68xf32, #tpu.memory_space<vmem>>) attributes {dimension_semantics = [#tpu.dimension_semantics<arbitrary>], iteration_bounds = array<i64: 1>, scalar_prefetch = 0 : i64, scratch_operands = 0 : i64, tpu.core_type = #tpu.core_type<tc>, window_params = [{pipeline_mode = #tpu.pipeline_mode<synchronous>, transform_indices = @transform_0, window_bounds = array<i64: 2, 8, 68>}, {pipeline_mode = #tpu.pipeline_mode<synchronous>, transform_indices = @transform_1, window_bounds = array<i64: 68, 32>}, {pipeline_mode = #tpu.pipeline_mode<synchronous>, transform_indices = @transform_2, window_bounds = array<i64: 1, 32>}, {pipeline_mode = #tpu.pipeline_mode<synchronous>, transform_indices = @transform_3, window_bounds = array<i64: 68, 32>}, {pipeline_mode = #tpu.pipeline_mode<synchronous>, transform_indices = @transform_4, window_bounds = array<i64: 1, 32>}, {pipeline_mode = #tpu.pipeline_mode<synchronous>, transform_indices = @transform_5, window_bounds = array<i64: 2, 32>}, {pipeline_mode = #tpu.pipeline_mode<synchronous>, transform_indices = @transform_6, window_bounds = array<i64: 2, 8, 68>}]} {
    %c0 = arith.constant 0 : index
    %c0_0 = arith.constant 0 : index
    %0 = vector.load %arg2[%c0, %c0_0] : memref<68x32xf32, #tpu.memory_space<vmem>>, vector<68x32xf32>
    %c0_1 = arith.constant 0 : index
    %c0_2 = arith.constant 0 : index
    %1 = vector.load %arg4[%c0_1, %c0_2] : memref<68x32xf32, #tpu.memory_space<vmem>>, vector<68x32xf32>
    %c0_3 = arith.constant 0 : index
    %c0_4 = arith.constant 0 : index
    %c0_5 = arith.constant 0 : index
    %2 = vector.load %arg1[%c0_3, %c0_4, %c0_5] : memref<2x8x68xf32, #tpu.memory_space<vmem>>, vector<2x8x68xf32>
    %3 = vector.shape_cast %2 : vector<2x8x68xf32> to vector<16x68xf32>
    %cst = arith.constant dense<0.000000e+00> : vector<16x32xf32>
    %4 = tpu.matmul %3, %0, %cst {dimension_numbers = #tpu.dot_dimension_numbers<[1], [0], [0], [1], [0, 0, 1, 1], [], []>} : vector<16x68xf32>, vector<68x32xf32>, vector<16x32xf32> -> vector<16x32xf32>
    %c0_6 = arith.constant 0 : index
    %c0_7 = arith.constant 0 : index
    %5 = vector.load %arg3[%c0_6, %c0_7] : memref<1x32xf32, #tpu.memory_space<vmem>>, vector<1x32xf32>
    %6 = vector.broadcast %5 : vector<1x32xf32> to vector<16x32xf32>
    %7 = arith.addf %4, %6 : vector<16x32xf32>
    %cst_8 = arith.constant dense<0.000000e+00> : vector<16x32xf32>
    %8 = tpu.matmul %3, %1, %cst_8 {dimension_numbers = #tpu.dot_dimension_numbers<[1], [0], [0], [1], [0, 0, 1, 1], [], []>} : vector<16x68xf32>, vector<68x32xf32>, vector<16x32xf32> -> vector<16x32xf32>
    %c0_9 = arith.constant 0 : index
    %c0_10 = arith.constant 0 : index
    %9 = vector.load %arg5[%c0_9, %c0_10] : memref<1x32xf32, #tpu.memory_space<vmem>>, vector<1x32xf32>
    %10 = vector.broadcast %9 : vector<1x32xf32> to vector<16x32xf32>
    %11 = arith.addf %8, %10 : vector<16x32xf32>
    %cst_11 = arith.constant 0.000000e+00 : f32
    %12 = vector.broadcast %cst_11 : f32 to vector<16x32xf32>
    %13 = arith.subf %12, %7 : vector<16x32xf32>
    %14 = math.exp %13 : vector<16x32xf32>
    %cst_12 = arith.constant 1.000000e+00 : f32
    %15 = vector.broadcast %cst_12 : f32 to vector<16x32xf32>
    %16 = arith.addf %15, %14 : vector<16x32xf32>
    %cst_13 = arith.constant 1.000000e+00 : f32
    %17 = vector.broadcast %cst_13 : f32 to vector<16x32xf32>
    %18 = arith.divf %17, %16 : vector<16x32xf32>
    %19 = vector.shape_cast %18 : vector<16x32xf32> to vector<2x8x32xf32>
    %20 = math.tanh %11 : vector<16x32xf32>
    %21 = vector.shape_cast %20 : vector<16x32xf32> to vector<2x8x32xf32>
    %22 = arith.mulf %19, %21 : vector<2x8x32xf32>
    %cst_14 = arith.constant dense<0.000000e+00> : vector<2x32xf32>
    %23 = vector.multi_reduction <add>, %22, %cst_14 [1] : vector<2x8x32xf32> to vector<2x32xf32>
    %24 = math.tanh %23 : vector<2x32xf32>
    %c0_15 = arith.constant 0 : index
    %c0_16 = arith.constant 0 : index
    %25 = vector.load %arg6[%c0_15, %c0_16] : memref<2x32xf32, #tpu.memory_space<vmem>>, vector<2x32xf32>
    %26 = arith.mulf %24, %24 : vector<2x32xf32>
    %cst_17 = arith.constant 1.000000e+00 : f32
    %27 = vector.broadcast %cst_17 : f32 to vector<2x32xf32>
    %28 = arith.subf %27, %26 : vector<2x32xf32>
    %29 = arith.mulf %25, %28 : vector<2x32xf32>
    %30 = vector.shape_cast %29 : vector<2x32xf32> to vector<2x1x32xf32>
    %31 = vector.broadcast %30 : vector<2x1x32xf32> to vector<2x8x32xf32>
    %32 = arith.mulf %31, %21 : vector<2x8x32xf32>
    %33 = arith.mulf %32, %19 : vector<2x8x32xf32>
    %cst_18 = arith.constant 1.000000e+00 : f32
    %34 = vector.broadcast %cst_18 : f32 to vector<2x8x32xf32>
    %35 = arith.subf %34, %19 : vector<2x8x32xf32>
    %36 = arith.mulf %33, %35 : vector<2x8x32xf32>
    %37 = vector.shape_cast %36 : vector<2x8x32xf32> to vector<16x32xf32>
    %38 = vector.broadcast %30 : vector<2x1x32xf32> to vector<2x8x32xf32>
    %39 = arith.mulf %38, %19 : vector<2x8x32xf32>
    %40 = arith.mulf %21, %21 : vector<2x8x32xf32>
    %cst_19 = arith.constant 1.000000e+00 : f32
    %41 = vector.broadcast %cst_19 : f32 to vector<2x8x32xf32>
    %42 = arith.subf %41, %40 : vector<2x8x32xf32>
    %43 = arith.mulf %39, %42 : vector<2x8x32xf32>
    %44 = vector.shape_cast %43 : vector<2x8x32xf32> to vector<16x32xf32>
    %cst_20 = arith.constant dense<0.000000e+00> : vector<16x68xf32>
    %45 = tpu.matmul %37, %0, %cst_20 {dimension_numbers = #tpu.dot_dimension_numbers<[1], [1], [0], [0], [0, 0, 1, 0], [], []>} : vector<16x32xf32>, vector<68x32xf32>, vector<16x68xf32> -> vector<16x68xf32>
    %cst_21 = arith.constant dense<0.000000e+00> : vector<16x68xf32>
    %46 = tpu.matmul %44, %1, %cst_21 {dimension_numbers = #tpu.dot_dimension_numbers<[1], [1], [0], [0], [0, 0, 1, 0], [], []>} : vector<16x32xf32>, vector<68x32xf32>, vector<16x68xf32> -> vector<16x68xf32>
    %47 = arith.addf %45, %46 : vector<16x68xf32>
    %48 = vector.shape_cast %47 : vector<16x68xf32> to vector<2x8x68xf32>
    %c0_22 = arith.constant 0 : index
    %c0_23 = arith.constant 0 : index
    %c0_24 = arith.constant 0 : index
    %49 = vector.load %arg7[%c0_22, %c0_23, %c0_24] : memref<2x8x68xf32, #tpu.memory_space<vmem>>, vector<2x8x68xf32>
    tpu.vector_store %arg7[%c0_22, %c0_23, %c0_24], %48 {strides = array<i32>} : memref<2x8x68xf32, #tpu.memory_space<vmem>>, vector<2x8x68xf32>,
    return
  }
  func.func @transform_0(%arg0: i32) -> (i32, i32, i32) {
    %c0_i32 = arith.constant 0 : i32
    %c0_i32_0 = arith.constant 0 : i32
    %c0_i32_1 = arith.constant 0 : i32
    %c0_i32_2 = arith.constant 0 : i32
    return %c0_i32, %c0_i32_0, %c0_i32_1 : i32, i32, i32
  }
  func.func @transform_1(%arg0: i32) -> (i32, i32) {
    %c0_i32 = arith.constant 0 : i32
    %c0_i32_0 = arith.constant 0 : i32
    %c0_i32_1 = arith.constant 0 : i32
    return %c0_i32, %c0_i32_0 : i32, i32
  }
  func.func @transform_2(%arg0: i32) -> (i32, i32) {
    %c0_i32 = arith.constant 0 : i32
    %c0_i32_0 = arith.constant 0 : i32
    %c0_i32_1 = arith.constant 0 : i32
    return %c0_i32, %c0_i32_0 : i32, i32
  }
  func.func @transform_3(%arg0: i32) -> (i32, i32) {
    %c0_i32 = arith.constant 0 : i32
    %c0_i32_0 = arith.constant 0 : i32
    %c0_i32_1 = arith.constant 0 : i32
    return %c0_i32, %c0_i32_0 : i32, i32
  }
  func.func @transform_4(%arg0: i32) -> (i32, i32) {
    %c0_i32 = arith.constant 0 : i32
    %c0_i32_0 = arith.constant 0 : i32
    %c0_i32_1 = arith.constant 0 : i32
    return %c0_i32, %c0_i32_0 : i32, i32
  }
  func.func @transform_5(%arg0: i32) -> (i32, i32) {
    %c0_i32 = arith.constant 0 : i32
    %c0_i32_0 = arith.constant 0 : i32
    %c0_i32_1 = arith.constant 0 : i32
    return %c0_i32, %c0_i32_0 : i32, i32
  }
  func.func @transform_6(%arg0: i32) -> (i32, i32, i32) {
    %c0_i32 = arith.constant 0 : i32
    %c0_i32_0 = arith.constant 0 : i32
    %c0_i32_1 = arith.constant 0 : i32
    %c0_i32_2 = arith.constant 0 : i32
    return %c0_i32, %c0_i32_0, %c0_i32_1 : i32, i32, i32
  }
}

module attributes {stable_mosaic.version = 11 : i64} {
  func.func @_gcn_layer_bwd_kernel(%arg0: i32, %arg1: memref<2x8x32xf32, #tpu.memory_space<vmem>>, %arg2: memref<2x8x8xf32, #tpu.memory_space<vmem>>, %arg3: memref<2x8xf32, #tpu.memory_space<vmem>>, %arg4: memref<32x32xf32, #tpu.memory_space<vmem>>, %arg5: memref<1x32xf32, #tpu.memory_space<vmem>>, %arg6: memref<32x32xf32, #tpu.memory_space<vmem>>, %arg7: memref<1x32xf32, #tpu.memory_space<vmem>>, %arg8: memref<2x8x32xf32, #tpu.memory_space<vmem>>, %arg9: memref<2x8x32xf32, #tpu.memory_space<vmem>>, %arg10: memref<2x8x8xf32, #tpu.memory_space<vmem>>) attributes {dimension_semantics = [#tpu.dimension_semantics<arbitrary>], iteration_bounds = array<i64: 1>, scalar_prefetch = 0 : i64, scratch_operands = 0 : i64, tpu.core_type = #tpu.core_type<tc>, window_params = [{pipeline_mode = #tpu.pipeline_mode<synchronous>, transform_indices = @transform_0, window_bounds = array<i64: 2, 8, 32>}, {pipeline_mode = #tpu.pipeline_mode<synchronous>, transform_indices = @transform_1, window_bounds = array<i64: 2, 8, 8>}, {pipeline_mode = #tpu.pipeline_mode<synchronous>, transform_indices = @transform_2, window_bounds = array<i64: 2, 8>}, {pipeline_mode = #tpu.pipeline_mode<synchronous>, transform_indices = @transform_3, window_bounds = array<i64: 32, 32>}, {pipeline_mode = #tpu.pipeline_mode<synchronous>, transform_indices = @transform_4, window_bounds = array<i64: 1, 32>}, {pipeline_mode = #tpu.pipeline_mode<synchronous>, transform_indices = @transform_5, window_bounds = array<i64: 32, 32>}, {pipeline_mode = #tpu.pipeline_mode<synchronous>, transform_indices = @transform_6, window_bounds = array<i64: 1, 32>}, {pipeline_mode = #tpu.pipeline_mode<synchronous>, transform_indices = @transform_7, window_bounds = array<i64: 2, 8, 32>}, {pipeline_mode = #tpu.pipeline_mode<synchronous>, transform_indices = @transform_8, window_bounds = array<i64: 2, 8, 32>}, {pipeline_mode = #tpu.pipeline_mode<synchronous>, transform_indices = @transform_9, window_bounds = array<i64: 2, 8, 8>}]} {
    %c0 = arith.constant 0 : index
    %c0_0 = arith.constant 0 : index
    %0 = vector.load %arg4[%c0, %c0_0] : memref<32x32xf32, #tpu.memory_space<vmem>>, vector<32x32xf32>
    %c0_1 = arith.constant 0 : index
    %c0_2 = arith.constant 0 : index
    %1 = vector.load %arg6[%c0_1, %c0_2] : memref<32x32xf32, #tpu.memory_space<vmem>>, vector<32x32xf32>
    %c0_3 = arith.constant 0 : index
    %c0_4 = arith.constant 0 : index
    %c0_5 = arith.constant 0 : index
    %2 = vector.load %arg1[%c0_3, %c0_4, %c0_5] : memref<2x8x32xf32, #tpu.memory_space<vmem>>, vector<2x8x32xf32>
    %3 = vector.shape_cast %2 : vector<2x8x32xf32> to vector<16x32xf32>
    %cst = arith.constant dense<0.000000e+00> : vector<16x32xf32>
    %4 = tpu.matmul %3, %0, %cst {dimension_numbers = #tpu.dot_dimension_numbers<[1], [0], [0], [1], [0, 0, 1, 1], [], []>} : vector<16x32xf32>, vector<32x32xf32>, vector<16x32xf32> -> vector<16x32xf32>
    %c0_6 = arith.constant 0 : index
    %c0_7 = arith.constant 0 : index
    %5 = vector.load %arg5[%c0_6, %c0_7] : memref<1x32xf32, #tpu.memory_space<vmem>>, vector<1x32xf32>
    %6 = vector.broadcast %5 : vector<1x32xf32> to vector<16x32xf32>
    %7 = arith.addf %4, %6 : vector<16x32xf32>
    %cst_8 = arith.constant dense<0.000000e+00> : vector<16x32xf32>
    %8 = tpu.matmul %7, %1, %cst_8 {dimension_numbers = #tpu.dot_dimension_numbers<[1], [0], [0], [1], [0, 0, 1, 1], [], []>} : vector<16x32xf32>, vector<32x32xf32>, vector<16x32xf32> -> vector<16x32xf32>
    %9 = vector.shape_cast %8 : vector<16x32xf32> to vector<2x8x32xf32>
    %10 = tpu.iota {dimensions = array<i32: 0>} : vector<8x8xi32>
    %11 = tpu.iota {dimensions = array<i32: 1>} : vector<8x8xi32>
    %12 = arith.cmpi eq, %10, %11 : vector<8x8xi32>
    %13 = arith.extui %12 : vector<8x8xi1> to vector<8x8xi32>
    %14 = arith.sitofp %13 : vector<8x8xi32> to vector<8x8xf32>
    %c0_9 = arith.constant 0 : index
    %c0_10 = arith.constant 0 : index
    %c0_11 = arith.constant 0 : index
    %15 = vector.load %arg2[%c0_9, %c0_10, %c0_11] : memref<2x8x8xf32, #tpu.memory_space<vmem>>, vector<2x8x8xf32>
    %cst_12 = arith.constant 1.000000e+00 : f32
    %16 = vector.broadcast %cst_12 : f32 to vector<8x8xf32>
    %17 = arith.subf %16, %14 : vector<8x8xf32>
    %18 = vector.shape_cast %17 : vector<8x8xf32> to vector<1x8x8xf32>
    %19 = vector.broadcast %18 : vector<1x8x8xf32> to vector<2x8x8xf32>
    %20 = arith.mulf %15, %19 : vector<2x8x8xf32>
    %21 = vector.shape_cast %14 : vector<8x8xf32> to vector<1x8x8xf32>
    %22 = vector.broadcast %21 : vector<1x8x8xf32> to vector<2x8x8xf32>
    %23 = arith.addf %20, %22 : vector<2x8x8xf32>
    %cst_13 = arith.constant dense<0.000000e+00> : vector<2x8xf32>
    %24 = vector.multi_reduction <add>, %23, %cst_13 [2] : vector<2x8x8xf32> to vector<2x8xf32>
    %cst_14 = arith.constant 1.000000e+00 : f32
    %25 = vector.broadcast %cst_14 : f32 to vector<2x8xf32>
    %26 = arith.maximumf %24, %25 : vector<2x8xf32>
    %27 = math.rsqrt %26 : vector<2x8xf32>
    %28 = vector.shape_cast %27 : vector<2x8xf32> to vector<2x8x1xf32>
    %29 = vector.broadcast %28 : vector<2x8x1xf32> to vector<2x8x8xf32>
    %30 = arith.mulf %23, %29 : vector<2x8x8xf32>
    %31 = vector.shape_cast %27 : vector<2x8xf32> to vector<2x1x8xf32>
    %32 = vector.broadcast %31 : vector<2x1x8xf32> to vector<2x8x8xf32>
    %33 = arith.mulf %30, %32 : vector<2x8x8xf32>
    "tpu.trace_start"() <{level = 10 : i32, message = "bij,bjh->bih"}> : () -> ()
    %cst_15 = arith.constant dense<0.000000e+00> : vector<2x8x32xf32>
    %34 = tpu.matmul %33, %9, %cst_15 {dimension_numbers = #tpu.dot_dimension_numbers<[2], [1], [1], [2], [0, 0, 0, 1, 1, 2], [0], [0]>} : vector<2x8x8xf32>, vector<2x8x32xf32>, vector<2x8x32xf32> -> vector<2x8x32xf32>
    "tpu.trace_stop"() : () -> ()
    %c0_16 = arith.constant 0 : index
    %c0_17 = arith.constant 0 : index
    %35 = vector.load %arg7[%c0_16, %c0_17] : memref<1x32xf32, #tpu.memory_space<vmem>>, vector<1x32xf32>
    %36 = vector.shape_cast %35 : vector<1x32xf32> to vector<1x1x32xf32>
    %37 = vector.broadcast %36 : vector<1x1x32xf32> to vector<2x8x32xf32>
    %38 = arith.addf %34, %37 : vector<2x8x32xf32>
    %39 = math.tanh %38 : vector<2x8x32xf32>
    %c0_18 = arith.constant 0 : index
    %c0_19 = arith.constant 0 : index
    %c0_20 = arith.constant 0 : index
    %40 = vector.load %arg8[%c0_18, %c0_19, %c0_20] : memref<2x8x32xf32, #tpu.memory_space<vmem>>, vector<2x8x32xf32>
    %c0_21 = arith.constant 0 : index
    %c0_22 = arith.constant 0 : index
    %41 = vector.load %arg3[%c0_21, %c0_22] : memref<2x8xf32, #tpu.memory_space<vmem>>, vector<2x8xf32>
    %42 = vector.shape_cast %41 : vector<2x8xf32> to vector<2x8x1xf32>
    %43 = vector.broadcast %42 : vector<2x8x1xf32> to vector<2x8x32xf32>
    %44 = arith.mulf %40, %43 : vector<2x8x32xf32>
    %45 = arith.mulf %39, %39 : vector<2x8x32xf32>
    %cst_23 = arith.constant 1.000000e+00 : f32
    %46 = vector.broadcast %cst_23 : f32 to vector<2x8x32xf32>
    %47 = arith.subf %46, %45 : vector<2x8x32xf32>
    %48 = arith.mulf %44, %47 : vector<2x8x32xf32>
    "tpu.trace_start"() <{level = 10 : i32, message = "bih,bjh->bij"}> : () -> ()
    %cst_24 = arith.constant dense<0.000000e+00> : vector<2x8x8xf32>
    %49 = tpu.matmul %48, %9, %cst_24 {dimension_numbers = #tpu.dot_dimension_numbers<[2], [2], [1], [1], [0, 0, 0, 1, 1, 1], [0], [0]>} : vector<2x8x32xf32>, vector<2x8x32xf32>, vector<2x8x8xf32> -> vector<2x8x8xf32>
    "tpu.trace_stop"() : () -> ()
    %50 = arith.mulf %49, %23 : vector<2x8x8xf32>
    %51 = vector.shape_cast %27 : vector<2x8xf32> to vector<2x1x8xf32>
    %52 = vector.broadcast %51 : vector<2x1x8xf32> to vector<2x8x8xf32>
    %53 = arith.mulf %50, %52 : vector<2x8x8xf32>
    %cst_25 = arith.constant dense<0.000000e+00> : vector<2x8xf32>
    %54 = vector.multi_reduction <add>, %53, %cst_25 [2] : vector<2x8x8xf32> to vector<2x8xf32>
    %55 = vector.shape_cast %27 : vector<2x8xf32> to vector<2x8x1xf32>
    %56 = vector.broadcast %55 : vector<2x8x1xf32> to vector<2x8x8xf32>
    %57 = arith.mulf %50, %56 : vector<2x8x8xf32>
    %cst_26 = arith.constant dense<0.000000e+00> : vector<2x8xf32>
    %58 = vector.multi_reduction <add>, %57, %cst_26 [1] : vector<2x8x8xf32> to vector<2x8xf32>
    %59 = arith.addf %54, %58 : vector<2x8xf32>
    %cst_27 = arith.constant 1.000000e+00 : f32
    %60 = vector.broadcast %cst_27 : f32 to vector<2x8xf32>
    %61 = arith.cmpf ogt, %24, %60 : vector<2x8xf32>
    %cst_28 = arith.constant -5.000000e-01 : f32
    %62 = vector.broadcast %cst_28 : f32 to vector<2x8xf32>
    %63 = arith.mulf %62, %27 : vector<2x8xf32>
    %64 = arith.divf %63, %26 : vector<2x8xf32>
    %cst_29 = arith.constant 0.000000e+00 : f32
    %65 = vector.broadcast %cst_29 : f32 to vector<2x8xf32>
    %66 = arith.select %61, %64, %65 : vector<2x8xi1>, vector<2x8xf32>
    %67 = arith.mulf %59, %66 : vector<2x8xf32>
    %68 = vector.shape_cast %27 : vector<2x8xf32> to vector<2x8x1xf32>
    %69 = vector.broadcast %68 : vector<2x8x1xf32> to vector<2x8x8xf32>
    %70 = arith.mulf %49, %69 : vector<2x8x8xf32>
    %71 = vector.shape_cast %27 : vector<2x8xf32> to vector<2x1x8xf32>
    %72 = vector.broadcast %71 : vector<2x1x8xf32> to vector<2x8x8xf32>
    %73 = arith.mulf %70, %72 : vector<2x8x8xf32>
    %74 = vector.shape_cast %67 : vector<2x8xf32> to vector<2x8x1xf32>
    %75 = vector.broadcast %74 : vector<2x8x1xf32> to vector<2x8x8xf32>
    %76 = arith.addf %73, %75 : vector<2x8x8xf32>
    %cst_30 = arith.constant 1.000000e+00 : f32
    %77 = vector.broadcast %cst_30 : f32 to vector<8x8xf32>
    %78 = arith.subf %77, %14 : vector<8x8xf32>
    %79 = vector.shape_cast %78 : vector<8x8xf32> to vector<1x8x8xf32>
    %80 = vector.broadcast %79 : vector<1x8x8xf32> to vector<2x8x8xf32>
    %81 = arith.mulf %76, %80 : vector<2x8x8xf32>
    %c0_31 = arith.constant 0 : index
    %c0_32 = arith.constant 0 : index
    %c0_33 = arith.constant 0 : index
    %82 = vector.load %arg10[%c0_31, %c0_32, %c0_33] : memref<2x8x8xf32, #tpu.memory_space<vmem>>, vector<2x8x8xf32>
    tpu.vector_store %arg10[%c0_31, %c0_32, %c0_33], %81 {strides = array<i32>} : memref<2x8x8xf32, #tpu.memory_space<vmem>>, vector<2x8x8xf32>,
    %83 = vector.extract_strided_slice %33 {offsets = [0, 0, 0], sizes = [1, 8, 8], strides = [1, 1, 1]} : vector<2x8x8xf32> to vector<1x8x8xf32>
    %84 = vector.shape_cast %83 : vector<1x8x8xf32> to vector<8x8xf32>
    %85 = tpu.transpose %84, [1, 0] : vector<8x8xf32> -> vector<8x8xf32>
    %86 = vector.extract_strided_slice %48 {offsets = [0, 0, 0], sizes = [1, 8, 32], strides = [1, 1, 1]} : vector<2x8x32xf32> to vector<1x8x32xf32>
    %87 = vector.shape_cast %86 : vector<1x8x32xf32> to vector<8x32xf32>
    %cst_34 = arith.constant dense<0.000000e+00> : vector<8x32xf32>
    %88 = tpu.matmul %85, %87, %cst_34 {dimension_numbers = #tpu.dot_dimension_numbers<[1], [0], [0], [1], [0, 0, 1, 1], [], []>} : vector<8x8xf32>, vector<8x32xf32>, vector<8x32xf32> -> vector<8x32xf32>
    %cst_35 = arith.constant dense<0.000000e+00> : vector<8x32xf32>
    %89 = tpu.matmul %88, %1, %cst_35 {dimension_numbers = #tpu.dot_dimension_numbers<[1], [1], [0], [0], [0, 0, 1, 0], [], []>} : vector<8x32xf32>, vector<32x32xf32>, vector<8x32xf32> -> vector<8x32xf32>
    %cst_36 = arith.constant dense<0.000000e+00> : vector<8x32xf32>
    %90 = tpu.matmul %89, %0, %cst_36 {dimension_numbers = #tpu.dot_dimension_numbers<[1], [1], [0], [0], [0, 0, 1, 0], [], []>} : vector<8x32xf32>, vector<32x32xf32>, vector<8x32xf32> -> vector<8x32xf32>
    %c0_37 = arith.constant 0 : index
    %c0_38 = arith.constant 0 : index
    %c0_39 = arith.constant 0 : index
    %91 = vector.load %arg9[%c0_37, %c0_38, %c0_39] : memref<2x8x32xf32, #tpu.memory_space<vmem>>, vector<1x8x32xf32>
    %92 = vector.shape_cast %91 : vector<1x8x32xf32> to vector<8x32xf32>
    %93 = vector.shape_cast %90 : vector<8x32xf32> to vector<1x8x32xf32>
    tpu.vector_store %arg9[%c0_37, %c0_38, %c0_39], %93 {strides = array<i32>} : memref<2x8x32xf32, #tpu.memory_space<vmem>>, vector<1x8x32xf32>,
    %94 = vector.extract_strided_slice %33 {offsets = [1, 0, 0], sizes = [1, 8, 8], strides = [1, 1, 1]} : vector<2x8x8xf32> to vector<1x8x8xf32>
    %95 = vector.shape_cast %94 : vector<1x8x8xf32> to vector<8x8xf32>
    %96 = tpu.transpose %95, [1, 0] : vector<8x8xf32> -> vector<8x8xf32>
    %97 = vector.extract_strided_slice %48 {offsets = [1, 0, 0], sizes = [1, 8, 32], strides = [1, 1, 1]} : vector<2x8x32xf32> to vector<1x8x32xf32>
    %98 = vector.shape_cast %97 : vector<1x8x32xf32> to vector<8x32xf32>
    %cst_40 = arith.constant dense<0.000000e+00> : vector<8x32xf32>
    %99 = tpu.matmul %96, %98, %cst_40 {dimension_numbers = #tpu.dot_dimension_numbers<[1], [0], [0], [1], [0, 0, 1, 1], [], []>} : vector<8x8xf32>, vector<8x32xf32>, vector<8x32xf32> -> vector<8x32xf32>
    %cst_41 = arith.constant dense<0.000000e+00> : vector<8x32xf32>
    %100 = tpu.matmul %99, %1, %cst_41 {dimension_numbers = #tpu.dot_dimension_numbers<[1], [1], [0], [0], [0, 0, 1, 0], [], []>} : vector<8x32xf32>, vector<32x32xf32>, vector<8x32xf32> -> vector<8x32xf32>
    %cst_42 = arith.constant dense<0.000000e+00> : vector<8x32xf32>
    %101 = tpu.matmul %100, %0, %cst_42 {dimension_numbers = #tpu.dot_dimension_numbers<[1], [1], [0], [0], [0, 0, 1, 0], [], []>} : vector<8x32xf32>, vector<32x32xf32>, vector<8x32xf32> -> vector<8x32xf32>
    %c1 = arith.constant 1 : index
    %c0_43 = arith.constant 0 : index
    %c0_44 = arith.constant 0 : index
    %102 = vector.load %arg9[%c1, %c0_43, %c0_44] : memref<2x8x32xf32, #tpu.memory_space<vmem>>, vector<1x8x32xf32>
    %103 = vector.shape_cast %102 : vector<1x8x32xf32> to vector<8x32xf32>
    %104 = vector.shape_cast %101 : vector<8x32xf32> to vector<1x8x32xf32>
    tpu.vector_store %arg9[%c1, %c0_43, %c0_44], %104 {strides = array<i32>} : memref<2x8x32xf32, #tpu.memory_space<vmem>>, vector<1x8x32xf32>,
    return
  }
  func.func @transform_0(%arg0: i32) -> (i32, i32, i32) {
    %c0_i32 = arith.constant 0 : i32
    %c0_i32_0 = arith.constant 0 : i32
    %c0_i32_1 = arith.constant 0 : i32
    %c0_i32_2 = arith.constant 0 : i32
    return %c0_i32, %c0_i32_0, %c0_i32_1 : i32, i32, i32
  }
  func.func @transform_1(%arg0: i32) -> (i32, i32, i32) {
    %c0_i32 = arith.constant 0 : i32
    %c0_i32_0 = arith.constant 0 : i32
    %c0_i32_1 = arith.constant 0 : i32
    %c0_i32_2 = arith.constant 0 : i32
    return %c0_i32, %c0_i32_0, %c0_i32_1 : i32, i32, i32
  }
  func.func @transform_2(%arg0: i32) -> (i32, i32) {
    %c0_i32 = arith.constant 0 : i32
    %c0_i32_0 = arith.constant 0 : i32
    %c0_i32_1 = arith.constant 0 : i32
    return %c0_i32, %c0_i32_0 : i32, i32
  }
  func.func @transform_3(%arg0: i32) -> (i32, i32) {
    %c0_i32 = arith.constant 0 : i32
    %c0_i32_0 = arith.constant 0 : i32
    %c0_i32_1 = arith.constant 0 : i32
    return %c0_i32, %c0_i32_0 : i32, i32
  }
  func.func @transform_4(%arg0: i32) -> (i32, i32) {
    %c0_i32 = arith.constant 0 : i32
    %c0_i32_0 = arith.constant 0 : i32
    %c0_i32_1 = arith.constant 0 : i32
    return %c0_i32, %c0_i32_0 : i32, i32
  }
  func.func @transform_5(%arg0: i32) -> (i32, i32) {
    %c0_i32 = arith.constant 0 : i32
    %c0_i32_0 = arith.constant 0 : i32
    %c0_i32_1 = arith.constant 0 : i32
    return %c0_i32, %c0_i32_0 : i32, i32
  }
  func.func @transform_6(%arg0: i32) -> (i32, i32) {
    %c0_i32 = arith.constant 0 : i32
    %c0_i32_0 = arith.constant 0 : i32
    %c0_i32_1 = arith.constant 0 : i32
    return %c0_i32, %c0_i32_0 : i32, i32
  }
  func.func @transform_7(%arg0: i32) -> (i32, i32, i32) {
    %c0_i32 = arith.constant 0 : i32
    %c0_i32_0 = arith.constant 0 : i32
    %c0_i32_1 = arith.constant 0 : i32
    %c0_i32_2 = arith.constant 0 : i32
    return %c0_i32, %c0_i32_0, %c0_i32_1 : i32, i32, i32
  }
  func.func @transform_8(%arg0: i32) -> (i32, i32, i32) {
    %c0_i32 = arith.constant 0 : i32
    %c0_i32_0 = arith.constant 0 : i32
    %c0_i32_1 = arith.constant 0 : i32
    %c0_i32_2 = arith.constant 0 : i32
    return %c0_i32, %c0_i32_0, %c0_i32_1 : i32, i32, i32
  }
  func.func @transform_9(%arg0: i32) -> (i32, i32, i32) {
    %c0_i32 = arith.constant 0 : i32
    %c0_i32_0 = arith.constant 0 : i32
    %c0_i32_1 = arith.constant 0 : i32
    %c0_i32_2 = arith.constant 0 : i32
    return %c0_i32, %c0_i32_0, %c0_i32_1 : i32, i32, i32
  }
}

module attributes {stable_mosaic.version = 11 : i64} {
  func.func @_mask_adjs_kernel(%arg0: i32, %arg1: memref<2x8x8xf32, #tpu.memory_space<vmem>>, %arg2: memref<2x8xf32, #tpu.memory_space<vmem>>, %arg3: memref<2x8x8xf32, #tpu.memory_space<vmem>>) attributes {dimension_semantics = [#tpu.dimension_semantics<arbitrary>], iteration_bounds = array<i64: 1>, scalar_prefetch = 0 : i64, scratch_operands = 0 : i64, tpu.core_type = #tpu.core_type<tc>, window_params = [{pipeline_mode = #tpu.pipeline_mode<synchronous>, transform_indices = @transform_0, window_bounds = array<i64: 2, 8, 8>}, {pipeline_mode = #tpu.pipeline_mode<synchronous>, transform_indices = @transform_1, window_bounds = array<i64: 2, 8>}, {pipeline_mode = #tpu.pipeline_mode<synchronous>, transform_indices = @transform_2, window_bounds = array<i64: 2, 8, 8>}]} {
    %c0 = arith.constant 0 : index
    %c0_0 = arith.constant 0 : index
    %0 = vector.load %arg2[%c0, %c0_0] : memref<2x8xf32, #tpu.memory_space<vmem>>, vector<2x8xf32>
    %c0_1 = arith.constant 0 : index
    %c0_2 = arith.constant 0 : index
    %c0_3 = arith.constant 0 : index
    %1 = vector.load %arg1[%c0_1, %c0_2, %c0_3] : memref<2x8x8xf32, #tpu.memory_space<vmem>>, vector<2x8x8xf32>
    %2 = vector.shape_cast %0 : vector<2x8xf32> to vector<2x8x1xf32>
    %3 = vector.broadcast %2 : vector<2x8x1xf32> to vector<2x8x8xf32>
    %4 = arith.mulf %1, %3 : vector<2x8x8xf32>
    %5 = vector.shape_cast %0 : vector<2x8xf32> to vector<2x1x8xf32>
    %6 = vector.broadcast %5 : vector<2x1x8xf32> to vector<2x8x8xf32>
    %7 = arith.mulf %4, %6 : vector<2x8x8xf32>
    %c0_4 = arith.constant 0 : index
    %c0_5 = arith.constant 0 : index
    %c0_6 = arith.constant 0 : index
    %8 = vector.load %arg3[%c0_4, %c0_5, %c0_6] : memref<2x8x8xf32, #tpu.memory_space<vmem>>, vector<2x8x8xf32>
    tpu.vector_store %arg3[%c0_4, %c0_5, %c0_6], %7 {strides = array<i32>} : memref<2x8x8xf32, #tpu.memory_space<vmem>>, vector<2x8x8xf32>,
    return
  }
  func.func @transform_0(%arg0: i32) -> (i32, i32, i32) {
    %c0_i32 = arith.constant 0 : i32
    %c0_i32_0 = arith.constant 0 : i32
    %c0_i32_1 = arith.constant 0 : i32
    %c0_i32_2 = arith.constant 0 : i32
    return %c0_i32, %c0_i32_0, %c0_i32_1 : i32, i32, i32
  }
  func.func @transform_1(%arg0: i32) -> (i32, i32) {
    %c0_i32 = arith.constant 0 : i32
    %c0_i32_0 = arith.constant 0 : i32
    %c0_i32_1 = arith.constant 0 : i32
    return %c0_i32, %c0_i32_0 : i32, i32
  }
  func.func @transform_2(%arg0: i32) -> (i32, i32, i32) {
    %c0_i32 = arith.constant 0 : i32
    %c0_i32_0 = arith.constant 0 : i32
    %c0_i32_1 = arith.constant 0 : i32
    %c0_i32_2 = arith.constant 0 : i32
    return %c0_i32, %c0_i32_0, %c0_i32_1 : i32, i32, i32
  }
}

module attributes {stable_mosaic.version = 11 : i64} {
  func.func @_gcn_layer_bwd_kernel(%arg0: i32, %arg1: memref<2x8x4xf32, #tpu.memory_space<vmem>>, %arg2: memref<2x8x8xf32, #tpu.memory_space<vmem>>, %arg3: memref<2x8xf32, #tpu.memory_space<vmem>>, %arg4: memref<4x32xf32, #tpu.memory_space<vmem>>, %arg5: memref<1x32xf32, #tpu.memory_space<vmem>>, %arg6: memref<32x32xf32, #tpu.memory_space<vmem>>, %arg7: memref<1x32xf32, #tpu.memory_space<vmem>>, %arg8: memref<2x8x32xf32, #tpu.memory_space<vmem>>, %arg9: memref<2x8x4xf32, #tpu.memory_space<vmem>>, %arg10: memref<2x8x8xf32, #tpu.memory_space<vmem>>) attributes {dimension_semantics = [#tpu.dimension_semantics<arbitrary>], iteration_bounds = array<i64: 1>, scalar_prefetch = 0 : i64, scratch_operands = 0 : i64, tpu.core_type = #tpu.core_type<tc>, window_params = [{pipeline_mode = #tpu.pipeline_mode<synchronous>, transform_indices = @transform_0, window_bounds = array<i64: 2, 8, 4>}, {pipeline_mode = #tpu.pipeline_mode<synchronous>, transform_indices = @transform_1, window_bounds = array<i64: 2, 8, 8>}, {pipeline_mode = #tpu.pipeline_mode<synchronous>, transform_indices = @transform_2, window_bounds = array<i64: 2, 8>}, {pipeline_mode = #tpu.pipeline_mode<synchronous>, transform_indices = @transform_3, window_bounds = array<i64: 4, 32>}, {pipeline_mode = #tpu.pipeline_mode<synchronous>, transform_indices = @transform_4, window_bounds = array<i64: 1, 32>}, {pipeline_mode = #tpu.pipeline_mode<synchronous>, transform_indices = @transform_5, window_bounds = array<i64: 32, 32>}, {pipeline_mode = #tpu.pipeline_mode<synchronous>, transform_indices = @transform_6, window_bounds = array<i64: 1, 32>}, {pipeline_mode = #tpu.pipeline_mode<synchronous>, transform_indices = @transform_7, window_bounds = array<i64: 2, 8, 32>}, {pipeline_mode = #tpu.pipeline_mode<synchronous>, transform_indices = @transform_8, window_bounds = array<i64: 2, 8, 4>}, {pipeline_mode = #tpu.pipeline_mode<synchronous>, transform_indices = @transform_9, window_bounds = array<i64: 2, 8, 8>}]} {
    %c0 = arith.constant 0 : index
    %c0_0 = arith.constant 0 : index
    %0 = vector.load %arg4[%c0, %c0_0] : memref<4x32xf32, #tpu.memory_space<vmem>>, vector<4x32xf32>
    %c0_1 = arith.constant 0 : index
    %c0_2 = arith.constant 0 : index
    %1 = vector.load %arg6[%c0_1, %c0_2] : memref<32x32xf32, #tpu.memory_space<vmem>>, vector<32x32xf32>
    %c0_3 = arith.constant 0 : index
    %c0_4 = arith.constant 0 : index
    %c0_5 = arith.constant 0 : index
    %2 = vector.load %arg1[%c0_3, %c0_4, %c0_5] : memref<2x8x4xf32, #tpu.memory_space<vmem>>, vector<2x8x4xf32>
    %3 = vector.shape_cast %2 : vector<2x8x4xf32> to vector<16x4xf32>
    %cst = arith.constant dense<0.000000e+00> : vector<16x32xf32>
    %4 = tpu.matmul %3, %0, %cst {dimension_numbers = #tpu.dot_dimension_numbers<[1], [0], [0], [1], [0, 0, 1, 1], [], []>} : vector<16x4xf32>, vector<4x32xf32>, vector<16x32xf32> -> vector<16x32xf32>
    %c0_6 = arith.constant 0 : index
    %c0_7 = arith.constant 0 : index
    %5 = vector.load %arg5[%c0_6, %c0_7] : memref<1x32xf32, #tpu.memory_space<vmem>>, vector<1x32xf32>
    %6 = vector.broadcast %5 : vector<1x32xf32> to vector<16x32xf32>
    %7 = arith.addf %4, %6 : vector<16x32xf32>
    %cst_8 = arith.constant dense<0.000000e+00> : vector<16x32xf32>
    %8 = tpu.matmul %7, %1, %cst_8 {dimension_numbers = #tpu.dot_dimension_numbers<[1], [0], [0], [1], [0, 0, 1, 1], [], []>} : vector<16x32xf32>, vector<32x32xf32>, vector<16x32xf32> -> vector<16x32xf32>
    %9 = vector.shape_cast %8 : vector<16x32xf32> to vector<2x8x32xf32>
    %10 = tpu.iota {dimensions = array<i32: 0>} : vector<8x8xi32>
    %11 = tpu.iota {dimensions = array<i32: 1>} : vector<8x8xi32>
    %12 = arith.cmpi eq, %10, %11 : vector<8x8xi32>
    %13 = arith.extui %12 : vector<8x8xi1> to vector<8x8xi32>
    %14 = arith.sitofp %13 : vector<8x8xi32> to vector<8x8xf32>
    %c0_9 = arith.constant 0 : index
    %c0_10 = arith.constant 0 : index
    %c0_11 = arith.constant 0 : index
    %15 = vector.load %arg2[%c0_9, %c0_10, %c0_11] : memref<2x8x8xf32, #tpu.memory_space<vmem>>, vector<2x8x8xf32>
    %cst_12 = arith.constant 1.000000e+00 : f32
    %16 = vector.broadcast %cst_12 : f32 to vector<8x8xf32>
    %17 = arith.subf %16, %14 : vector<8x8xf32>
    %18 = vector.shape_cast %17 : vector<8x8xf32> to vector<1x8x8xf32>
    %19 = vector.broadcast %18 : vector<1x8x8xf32> to vector<2x8x8xf32>
    %20 = arith.mulf %15, %19 : vector<2x8x8xf32>
    %21 = vector.shape_cast %14 : vector<8x8xf32> to vector<1x8x8xf32>
    %22 = vector.broadcast %21 : vector<1x8x8xf32> to vector<2x8x8xf32>
    %23 = arith.addf %20, %22 : vector<2x8x8xf32>
    %cst_13 = arith.constant dense<0.000000e+00> : vector<2x8xf32>
    %24 = vector.multi_reduction <add>, %23, %cst_13 [2] : vector<2x8x8xf32> to vector<2x8xf32>
    %cst_14 = arith.constant 1.000000e+00 : f32
    %25 = vector.broadcast %cst_14 : f32 to vector<2x8xf32>
    %26 = arith.maximumf %24, %25 : vector<2x8xf32>
    %27 = math.rsqrt %26 : vector<2x8xf32>
    %28 = vector.shape_cast %27 : vector<2x8xf32> to vector<2x8x1xf32>
    %29 = vector.broadcast %28 : vector<2x8x1xf32> to vector<2x8x8xf32>
    %30 = arith.mulf %23, %29 : vector<2x8x8xf32>
    %31 = vector.shape_cast %27 : vector<2x8xf32> to vector<2x1x8xf32>
    %32 = vector.broadcast %31 : vector<2x1x8xf32> to vector<2x8x8xf32>
    %33 = arith.mulf %30, %32 : vector<2x8x8xf32>
    "tpu.trace_start"() <{level = 10 : i32, message = "bij,bjh->bih"}> : () -> ()
    %cst_15 = arith.constant dense<0.000000e+00> : vector<2x8x32xf32>
    %34 = tpu.matmul %33, %9, %cst_15 {dimension_numbers = #tpu.dot_dimension_numbers<[2], [1], [1], [2], [0, 0, 0, 1, 1, 2], [0], [0]>} : vector<2x8x8xf32>, vector<2x8x32xf32>, vector<2x8x32xf32> -> vector<2x8x32xf32>
    "tpu.trace_stop"() : () -> ()
    %c0_16 = arith.constant 0 : index
    %c0_17 = arith.constant 0 : index
    %35 = vector.load %arg7[%c0_16, %c0_17] : memref<1x32xf32, #tpu.memory_space<vmem>>, vector<1x32xf32>
    %36 = vector.shape_cast %35 : vector<1x32xf32> to vector<1x1x32xf32>
    %37 = vector.broadcast %36 : vector<1x1x32xf32> to vector<2x8x32xf32>
    %38 = arith.addf %34, %37 : vector<2x8x32xf32>
    %39 = math.tanh %38 : vector<2x8x32xf32>
    %c0_18 = arith.constant 0 : index
    %c0_19 = arith.constant 0 : index
    %c0_20 = arith.constant 0 : index
    %40 = vector.load %arg8[%c0_18, %c0_19, %c0_20] : memref<2x8x32xf32, #tpu.memory_space<vmem>>, vector<2x8x32xf32>
    %c0_21 = arith.constant 0 : index
    %c0_22 = arith.constant 0 : index
    %41 = vector.load %arg3[%c0_21, %c0_22] : memref<2x8xf32, #tpu.memory_space<vmem>>, vector<2x8xf32>
    %42 = vector.shape_cast %41 : vector<2x8xf32> to vector<2x8x1xf32>
    %43 = vector.broadcast %42 : vector<2x8x1xf32> to vector<2x8x32xf32>
    %44 = arith.mulf %40, %43 : vector<2x8x32xf32>
    %45 = arith.mulf %39, %39 : vector<2x8x32xf32>
    %cst_23 = arith.constant 1.000000e+00 : f32
    %46 = vector.broadcast %cst_23 : f32 to vector<2x8x32xf32>
    %47 = arith.subf %46, %45 : vector<2x8x32xf32>
    %48 = arith.mulf %44, %47 : vector<2x8x32xf32>
    "tpu.trace_start"() <{level = 10 : i32, message = "bih,bjh->bij"}> : () -> ()
    %cst_24 = arith.constant dense<0.000000e+00> : vector<2x8x8xf32>
    %49 = tpu.matmul %48, %9, %cst_24 {dimension_numbers = #tpu.dot_dimension_numbers<[2], [2], [1], [1], [0, 0, 0, 1, 1, 1], [0], [0]>} : vector<2x8x32xf32>, vector<2x8x32xf32>, vector<2x8x8xf32> -> vector<2x8x8xf32>
    "tpu.trace_stop"() : () -> ()
    %50 = arith.mulf %49, %23 : vector<2x8x8xf32>
    %51 = vector.shape_cast %27 : vector<2x8xf32> to vector<2x1x8xf32>
    %52 = vector.broadcast %51 : vector<2x1x8xf32> to vector<2x8x8xf32>
    %53 = arith.mulf %50, %52 : vector<2x8x8xf32>
    %cst_25 = arith.constant dense<0.000000e+00> : vector<2x8xf32>
    %54 = vector.multi_reduction <add>, %53, %cst_25 [2] : vector<2x8x8xf32> to vector<2x8xf32>
    %55 = vector.shape_cast %27 : vector<2x8xf32> to vector<2x8x1xf32>
    %56 = vector.broadcast %55 : vector<2x8x1xf32> to vector<2x8x8xf32>
    %57 = arith.mulf %50, %56 : vector<2x8x8xf32>
    %cst_26 = arith.constant dense<0.000000e+00> : vector<2x8xf32>
    %58 = vector.multi_reduction <add>, %57, %cst_26 [1] : vector<2x8x8xf32> to vector<2x8xf32>
    %59 = arith.addf %54, %58 : vector<2x8xf32>
    %cst_27 = arith.constant 1.000000e+00 : f32
    %60 = vector.broadcast %cst_27 : f32 to vector<2x8xf32>
    %61 = arith.cmpf ogt, %24, %60 : vector<2x8xf32>
    %cst_28 = arith.constant -5.000000e-01 : f32
    %62 = vector.broadcast %cst_28 : f32 to vector<2x8xf32>
    %63 = arith.mulf %62, %27 : vector<2x8xf32>
    %64 = arith.divf %63, %26 : vector<2x8xf32>
    %cst_29 = arith.constant 0.000000e+00 : f32
    %65 = vector.broadcast %cst_29 : f32 to vector<2x8xf32>
    %66 = arith.select %61, %64, %65 : vector<2x8xi1>, vector<2x8xf32>
    %67 = arith.mulf %59, %66 : vector<2x8xf32>
    %68 = vector.shape_cast %27 : vector<2x8xf32> to vector<2x8x1xf32>
    %69 = vector.broadcast %68 : vector<2x8x1xf32> to vector<2x8x8xf32>
    %70 = arith.mulf %49, %69 : vector<2x8x8xf32>
    %71 = vector.shape_cast %27 : vector<2x8xf32> to vector<2x1x8xf32>
    %72 = vector.broadcast %71 : vector<2x1x8xf32> to vector<2x8x8xf32>
    %73 = arith.mulf %70, %72 : vector<2x8x8xf32>
    %74 = vector.shape_cast %67 : vector<2x8xf32> to vector<2x8x1xf32>
    %75 = vector.broadcast %74 : vector<2x8x1xf32> to vector<2x8x8xf32>
    %76 = arith.addf %73, %75 : vector<2x8x8xf32>
    %cst_30 = arith.constant 1.000000e+00 : f32
    %77 = vector.broadcast %cst_30 : f32 to vector<8x8xf32>
    %78 = arith.subf %77, %14 : vector<8x8xf32>
    %79 = vector.shape_cast %78 : vector<8x8xf32> to vector<1x8x8xf32>
    %80 = vector.broadcast %79 : vector<1x8x8xf32> to vector<2x8x8xf32>
    %81 = arith.mulf %76, %80 : vector<2x8x8xf32>
    %c0_31 = arith.constant 0 : index
    %c0_32 = arith.constant 0 : index
    %c0_33 = arith.constant 0 : index
    %82 = vector.load %arg10[%c0_31, %c0_32, %c0_33] : memref<2x8x8xf32, #tpu.memory_space<vmem>>, vector<2x8x8xf32>
    tpu.vector_store %arg10[%c0_31, %c0_32, %c0_33], %81 {strides = array<i32>} : memref<2x8x8xf32, #tpu.memory_space<vmem>>, vector<2x8x8xf32>,
    %83 = vector.extract_strided_slice %33 {offsets = [0, 0, 0], sizes = [1, 8, 8], strides = [1, 1, 1]} : vector<2x8x8xf32> to vector<1x8x8xf32>
    %84 = vector.shape_cast %83 : vector<1x8x8xf32> to vector<8x8xf32>
    %85 = tpu.transpose %84, [1, 0] : vector<8x8xf32> -> vector<8x8xf32>
    %86 = vector.extract_strided_slice %48 {offsets = [0, 0, 0], sizes = [1, 8, 32], strides = [1, 1, 1]} : vector<2x8x32xf32> to vector<1x8x32xf32>
    %87 = vector.shape_cast %86 : vector<1x8x32xf32> to vector<8x32xf32>
    %cst_34 = arith.constant dense<0.000000e+00> : vector<8x32xf32>
    %88 = tpu.matmul %85, %87, %cst_34 {dimension_numbers = #tpu.dot_dimension_numbers<[1], [0], [0], [1], [0, 0, 1, 1], [], []>} : vector<8x8xf32>, vector<8x32xf32>, vector<8x32xf32> -> vector<8x32xf32>
    %cst_35 = arith.constant dense<0.000000e+00> : vector<8x32xf32>
    %89 = tpu.matmul %88, %1, %cst_35 {dimension_numbers = #tpu.dot_dimension_numbers<[1], [1], [0], [0], [0, 0, 1, 0], [], []>} : vector<8x32xf32>, vector<32x32xf32>, vector<8x32xf32> -> vector<8x32xf32>
    %cst_36 = arith.constant dense<0.000000e+00> : vector<8x4xf32>
    %90 = tpu.matmul %89, %0, %cst_36 {dimension_numbers = #tpu.dot_dimension_numbers<[1], [1], [0], [0], [0, 0, 1, 0], [], []>} : vector<8x32xf32>, vector<4x32xf32>, vector<8x4xf32> -> vector<8x4xf32>
    %c0_37 = arith.constant 0 : index
    %c0_38 = arith.constant 0 : index
    %c0_39 = arith.constant 0 : index
    %91 = vector.load %arg9[%c0_37, %c0_38, %c0_39] : memref<2x8x4xf32, #tpu.memory_space<vmem>>, vector<1x8x4xf32>
    %92 = vector.shape_cast %91 : vector<1x8x4xf32> to vector<8x4xf32>
    %93 = vector.shape_cast %90 : vector<8x4xf32> to vector<1x8x4xf32>
    tpu.vector_store %arg9[%c0_37, %c0_38, %c0_39], %93 {strides = array<i32>} : memref<2x8x4xf32, #tpu.memory_space<vmem>>, vector<1x8x4xf32>,
    %94 = vector.extract_strided_slice %33 {offsets = [1, 0, 0], sizes = [1, 8, 8], strides = [1, 1, 1]} : vector<2x8x8xf32> to vector<1x8x8xf32>
    %95 = vector.shape_cast %94 : vector<1x8x8xf32> to vector<8x8xf32>
    %96 = tpu.transpose %95, [1, 0] : vector<8x8xf32> -> vector<8x8xf32>
    %97 = vector.extract_strided_slice %48 {offsets = [1, 0, 0], sizes = [1, 8, 32], strides = [1, 1, 1]} : vector<2x8x32xf32> to vector<1x8x32xf32>
    %98 = vector.shape_cast %97 : vector<1x8x32xf32> to vector<8x32xf32>
    %cst_40 = arith.constant dense<0.000000e+00> : vector<8x32xf32>
    %99 = tpu.matmul %96, %98, %cst_40 {dimension_numbers = #tpu.dot_dimension_numbers<[1], [0], [0], [1], [0, 0, 1, 1], [], []>} : vector<8x8xf32>, vector<8x32xf32>, vector<8x32xf32> -> vector<8x32xf32>
    %cst_41 = arith.constant dense<0.000000e+00> : vector<8x32xf32>
    %100 = tpu.matmul %99, %1, %cst_41 {dimension_numbers = #tpu.dot_dimension_numbers<[1], [1], [0], [0], [0, 0, 1, 0], [], []>} : vector<8x32xf32>, vector<32x32xf32>, vector<8x32xf32> -> vector<8x32xf32>
    %cst_42 = arith.constant dense<0.000000e+00> : vector<8x4xf32>
    %101 = tpu.matmul %100, %0, %cst_42 {dimension_numbers = #tpu.dot_dimension_numbers<[1], [1], [0], [0], [0, 0, 1, 0], [], []>} : vector<8x32xf32>, vector<4x32xf32>, vector<8x4xf32> -> vector<8x4xf32>
    %c1 = arith.constant 1 : index
    %c0_43 = arith.constant 0 : index
    %c0_44 = arith.constant 0 : index
    %102 = vector.load %arg9[%c1, %c0_43, %c0_44] : memref<2x8x4xf32, #tpu.memory_space<vmem>>, vector<1x8x4xf32>
    %103 = vector.shape_cast %102 : vector<1x8x4xf32> to vector<8x4xf32>
    %104 = vector.shape_cast %101 : vector<8x4xf32> to vector<1x8x4xf32>
    tpu.vector_store %arg9[%c1, %c0_43, %c0_44], %104 {strides = array<i32>} : memref<2x8x4xf32, #tpu.memory_space<vmem>>, vector<1x8x4xf32>,
    return
  }
  func.func @transform_0(%arg0: i32) -> (i32, i32, i32) {
    %c0_i32 = arith.constant 0 : i32
    %c0_i32_0 = arith.constant 0 : i32
    %c0_i32_1 = arith.constant 0 : i32
    %c0_i32_2 = arith.constant 0 : i32
    return %c0_i32, %c0_i32_0, %c0_i32_1 : i32, i32, i32
  }
  func.func @transform_1(%arg0: i32) -> (i32, i32, i32) {
    %c0_i32 = arith.constant 0 : i32
    %c0_i32_0 = arith.constant 0 : i32
    %c0_i32_1 = arith.constant 0 : i32
    %c0_i32_2 = arith.constant 0 : i32
    return %c0_i32, %c0_i32_0, %c0_i32_1 : i32, i32, i32
  }
  func.func @transform_2(%arg0: i32) -> (i32, i32) {
    %c0_i32 = arith.constant 0 : i32
    %c0_i32_0 = arith.constant 0 : i32
    %c0_i32_1 = arith.constant 0 : i32
    return %c0_i32, %c0_i32_0 : i32, i32
  }
  func.func @transform_3(%arg0: i32) -> (i32, i32) {
    %c0_i32 = arith.constant 0 : i32
    %c0_i32_0 = arith.constant 0 : i32
    %c0_i32_1 = arith.constant 0 : i32
    return %c0_i32, %c0_i32_0 : i32, i32
  }
  func.func @transform_4(%arg0: i32) -> (i32, i32) {
    %c0_i32 = arith.constant 0 : i32
    %c0_i32_0 = arith.constant 0 : i32
    %c0_i32_1 = arith.constant 0 : i32
    return %c0_i32, %c0_i32_0 : i32, i32
  }
  func.func @transform_5(%arg0: i32) -> (i32, i32) {
    %c0_i32 = arith.constant 0 : i32
    %c0_i32_0 = arith.constant 0 : i32
    %c0_i32_1 = arith.constant 0 : i32
    return %c0_i32, %c0_i32_0 : i32, i32
  }
  func.func @transform_6(%arg0: i32) -> (i32, i32) {
    %c0_i32 = arith.constant 0 : i32
    %c0_i32_0 = arith.constant 0 : i32
    %c0_i32_1 = arith.constant 0 : i32
    return %c0_i32, %c0_i32_0 : i32, i32
  }
  func.func @transform_7(%arg0: i32) -> (i32, i32, i32) {
    %c0_i32 = arith.constant 0 : i32
    %c0_i32_0 = arith.constant 0 : i32
    %c0_i32_1 = arith.constant 0 : i32
    %c0_i32_2 = arith.constant 0 : i32
    return %c0_i32, %c0_i32_0, %c0_i32_1 : i32, i32, i32
  }
  func.func @transform_8(%arg0: i32) -> (i32, i32, i32) {
    %c0_i32 = arith.constant 0 : i32
    %c0_i32_0 = arith.constant 0 : i32
    %c0_i32_1 = arith.constant 0 : i32
    %c0_i32_2 = arith.constant 0 : i32
    return %c0_i32, %c0_i32_0, %c0_i32_1 : i32, i32, i32
  }
  func.func @transform_9(%arg0: i32) -> (i32, i32, i32) {
    %c0_i32 = arith.constant 0 : i32
    %c0_i32_0 = arith.constant 0 : i32
    %c0_i32_1 = arith.constant 0 : i32
    %c0_i32_2 = arith.constant 0 : i32
    return %c0_i32, %c0_i32_0, %c0_i32_1 : i32, i32, i32
  }
}

</mosaic_0001>

<bundles_post_ra>
// kernel: jvp__.3
= control target key start
LH: loop header
LB: loop body
LE: loop exit
PB: predicated region body
PF: predicated region fallthrough
CT: control target
= control target key end

     0   :  { %vm43_vm0 = vcmask 1043456   ;;  %vm36_vm1 = vcmask 31744   ;;  %v208_v9 = vlaneseq  ;;  %v512_v10 = vmov 0.0   ;;  %s606_s3 = inlined_call_operand.vmem [shape: f32[4,32], index: 3, kind: input, shape index: {}]   ;;  %s607_s0 = inlined_call_operand.vmem [shape: f32[2,8,4], index: 0, kind: input, shape index: {}]   ;;  %s608_s5 = inlined_call_operand.vmem [shape: f32[32,32], index: 5, kind: input, shape index: {}]   ;;  %s609_s1 = inlined_call_operand.vmem [shape: f32[2,8,8], index: 1, kind: input, shape index: {}]   ;;  %s610_s4 = inlined_call_operand.vmem [shape: f32[1,32], index: 4, kind: input, shape index: {}]   ;;  %s611_s2 = inlined_call_operand.vmem [shape: f32[2,8], index: 2, kind: input, shape index: {}]   ;;  %s612_s6 = inlined_call_operand.vmem [shape: f32[1,32], index: 6, kind: input, shape index: {}]   ;;  %s613_s7 = inlined_call_operand.vmem [shape: f32[2,8,32], index: 7, kind: output, shape index: {}]  }
   0x1   :  { %v28_v0 = vld [vmem:[%s606_s3] sm:$0xf]  ;;  %v27_v2 = vld [vmem:[%s607_s0 + $0x8] sm:$0xff]  ;;  %v124_v6 = vld [vmem:[%s608_s5 + $0x10] sm:$0xff]  ;;  %vm222_vm3 = vcmask 64512   ;;  %vm126_vm4 = vcmask 261120  }
   0x2   :  { %v26_v1 = vld [vmem:[%s607_s0] sm:$0xff]  ;;  %468 = vmatprep.subr.msk.mxu0 %vm43_vm0, %v28_v0  ;;  %v123_v4 = vld [vmem:[%s608_s5 + $0x8] sm:$0xff]  ;;  %v125_v7 = vld [vmem:[%s608_s5 + $0x18] sm:$0xff]  ;;  %v209_v11 = vshrl.u32 %v208_v9, 7  ;;  %v211_v12 = vand.u32 127, %v208_v9  ;;  %vm513_vm5 = vmmov 0  }
   0x3   :  { %470 = vmatprep.mubr.msk.f32.mxu0 %vm36_vm1, %v26_v1  ;;  %v122_v3 = vld [vmem:[%s608_s5] sm:$0xff]  ;;  %469 = vmatpush3.msk.msra.mxu0 %vm43_vm0, %v28_v0  ;;  %v498_v8 = vpack.c.bf16 %v125_v7, %v124_v6  ;;  %v216_v15 = vld [vmem:[%s609_s1 + $0x8] sm:$0xff] }
   0x4   :  { %v494_v5 = vpack.c.bf16 %v123_v4, %v122_v3  ;;  %471 = vmatmul.mubr.msk.f32.vlgmr.msra.gmra.mrb[0].mxu0 %vm36_vm1, %v27_v2  ;;  %484 = vmatprep.subr.mxu0 %v512_v10  ;;  %vm212_vm2 = vcmp.eq.s32.totalorder %v209_v11, %v211_v12  ;;  %v215_v14 = vld [vmem:[%s609_s1] sm:$0xff]  ;;  %v425_v28 = vsub.s32 0, %v209_v11  ;;  %v432_v29 = vsub.s32 1, %v209_v11 }
   0x5   :  { %v451_v13 = vsel %vm212_vm2, 1.0, %v512_v10  ;;  %v445_v23 = vld [vmem:[%s610_s4] ss:$0 sm:$0xff]  ;;  %486 = vmatprep.mubr.msk.f32.mxu0 %vm513_vm5, %v512_v10  ;;  %v239_v37 = vsub.s32 %v211_v12, %v209_v11 }
   0x6   :  { %495 = vmatprep.subr.bf16.mxu1 %v494_v5  ;;  %v217_v16 = vsub.f32 1.0, %v451_v13  ;;  %v422_v30 = vld [vmem:[%s611_s2] sm:$0x3] }
   0x7   :  { %497 = vmatpush3.bf16.msra.mxu1 %v494_v5  ;;  %v426_v31 = vrot.slane %v422_v30, %v425_v28  ;;  %v433_v32 = vrot.slane %v422_v30, %v432_v29  ;;  %v452_v48 = vld [vmem:[%s612_s6] ss:$0 sm:$0xff] }
   0x8   :  { %499 = vmatprep.subr.bf16.mxu1 %v498_v8  ;;  %v218_v17 = vmul.f32 %v217_v16, %v215_v14  ;;  %v219_v18 = vmul.f32 %v217_v16, %v216_v15 }
   0x9   :  { %428 = vbcast.lane.b32.xlu1 %v426_v31, 256 }
   0xa   :  { %v220_v19 = vadd.f32 %v451_v13, %v218_v17  ;;  %v221_v20 = vadd.f32 %v451_v13, %v219_v18 }
   0xb   :  { %501 = vmatpush3.bf16.msra.mxu1 %v498_v8 }
   0xc   :  { %v223_v21 = vsel %vm222_vm3, %v220_v19, 0.0  ;;  %v226_v22 = vsel %vm222_vm3, %v221_v20, 0.0 }
   0xd   :  { %224 = vadd.xlane.f32.xlu0 %v223_v21  ;;  %435 = vbcast.lane.b32.xlu1 %v433_v32, 256 }
  0x11   :  { %227 = vadd.xlane.f32.xlu0 %v226_v22 }
  0x7b   :  { %v429_v55 = vpop.permute.xlu1 %428 }
  0x7f   :  { %v436_v58 = vpop.permute.xlu1 %435 }
  0x9a   :  { %v225_v33 = vpop.xlane.xlu0 %224 }
  0x9b   :  { %v229_v34 = vmax.f32 %v225_v33, 1.0 }
  0x9d   :  { %504 = vrsqrt.f32 %v229_v34 }
  0x9e   :  { %v228_v35 = vpop.xlane.xlu0 %227 }
  0x9f   :  { %v230_v36 = vmax.f32 %v228_v35, 1.0 }
  0xa1   :  { %506 = vrsqrt.f32 %v230_v36 }
  0xa7   :  { %v505_v38 = vpop.eup %504 }
  0xa8   :  { %v233_v39 = vmul.f32 %v505_v38, %v220_v19  ;;  %v240_v40 = vrot.slane %v505_v38, %v239_v37 }
  0xaa   :  { %v265_v44 = vmul.f32 %v240_v40, %v233_v39 }
  0xab   :  { %v507_v41 = vpop.eup %506 }
  0xac   :  { %v234_v42 = vmul.f32 %v507_v41, %v221_v20  ;;  %v244_v43 = vrot.slane %v507_v41, %v239_v37 }
  0xae   :  { %v266_v47 = vmul.f32 %v244_v43, %v234_v42 }
  0xd7   :  { %v472_v24 = vpop.f32.mrb[0].mxu0 }
  0xd8   :  { %v113_v25 = vpop.f32.mrb[1].mxu0  ;;  %v119_v27 = vadd.f32 %v472_v24, %v445_v23 }
  0xd9   :  { %v114_v26 = vadd.f32 %v445_v23, %v113_v25 }
  0xdb   :  { %481 = vmatprep.mubr.msk.f32.mxu1 %vm126_vm4, %v114_v26 }
  0xdc   :  { %482 = vmatmul.mubr.msk.f32.vlgmr.msra.gmra.mrb[0].mxu1 %vm126_vm4, %v119_v27 }
 0x1af   :  { %v483_v45 = vpop.f32.mrb[0].mxu1 }
 0x1b0   :  { %v199_v46 = vpop.f32.mrb[1].mxu1 }
 0x1b1   :  { %485 = vmatpush3.msra.mxu0 %v199_v46 }
 0x1b2   :  { %489 = vmatprep.subr.mxu0 %v512_v10  ;;  %487 = vmatmul.mubr.msk.f32.vlgmr.msra.gmra.mrb[2].mxu0 %vm222_vm3, %v265_v44 }
 0x1b3   :  { %490 = vmatpush3.msra.mxu0 %v483_v45  ;;  %491 = vmatprep.mubr.msk.f32.mxu0 %vm513_vm5, %v512_v10 }
 0x1b6   :  { %492 = vmatmul.mubr.msk.f32.vlgmr.msra.gmra.mrb[4].mxu0 %vm222_vm3, %v266_v47 }
 0x285   :  { %v343_v49 = vpop.f32.mrb[2].mxu0 }
 0x286   :  { %v344_v50 = vadd.f32 %v452_v48, %v343_v49  ;;  %v488_v51 = vpop.f32.mrb[3].mxu0 }
 0x288   :  { %508 = vtanh.f32 %v344_v50 }
 0x289   :  { %v416_v52 = vpop.f32.mrb[4].mxu0 }
 0x28a   :  { %v417_v53 = vadd.f32 %v452_v48, %v416_v52  ;;  %v493_v54 = vpop.f32.mrb[5].mxu0 }
 0x28c   :  { %510 = vtanh.f32 %v417_v53 }
 0x292   :  { %v509_v56 = vpop.eup %508 }
 0x293   :  { %v437_v57 = vmul.f32 %v509_v56, %v429_v55 }
 0x295   :  { %439 = vst.msk [vmem:[%s613_s7] sm:$0xff] %vm126_vm4, %v437_v57 }
 0x296   :  { %v511_v59 = vpop.eup %510 }
 0x297   :  { %v438_v60 = vmul.f32 %v511_v59, %v436_v58 }
 0x299   :  { %440 = vst.msk [vmem:[%s613_s7 + $0x8] sm:$0xff] %vm126_vm4, %v438_v60 }

// kernel: jvp__.4
= control target key start
LH: loop header
LB: loop body
LE: loop exit
PB: predicated region body
PF: predicated region fallthrough
CT: control target
= control target key end

     0   :  { %vm39_vm0 = vcmask 261120   ;;  %v206_v14 = vlaneseq  ;;  %v526_v15 = vmov 0.0   ;;  %vm220_vm2 = vcmask 64512   ;;  %s629_s3 = inlined_call_operand.vmem [shape: f32[32,32], index: 3, kind: input, shape index: {}]   ;;  %s630_s0 = inlined_call_operand.vmem [shape: f32[2,8,32], index: 0, kind: input, shape index: {}]   ;;  %s631_s5 = inlined_call_operand.vmem [shape: f32[32,32], index: 5, kind: input, shape index: {}]   ;;  %s632_s1 = inlined_call_operand.vmem [shape: f32[2,8,8], index: 1, kind: input, shape index: {}]   ;;  %s633_s4 = inlined_call_operand.vmem [shape: f32[1,32], index: 4, kind: input, shape index: {}]   ;;  %s634_s2 = inlined_call_operand.vmem [shape: f32[2,8], index: 2, kind: input, shape index: {}]   ;;  %s635_s6 = inlined_call_operand.vmem [shape: f32[1,32], index: 6, kind: input, shape index: {}]   ;;  %s636_s7 = inlined_call_operand.vmem [shape: f32[2,8,32], index: 7, kind: output, shape index: {}]  }
   0x1   :  { %v28_v0 = vld [vmem:[%s629_s3] sm:$0xff]  ;;  %v29_v1 = vld [vmem:[%s629_s3 + $0x8] sm:$0xff]  ;;  %v30_v2 = vld [vmem:[%s629_s3 + $0x10] sm:$0xff]  ;;  %vm527_vm3 = vmmov 0  }
   0x2   :  { %v500_v3 = vpack.c.bf16 %v29_v1, %v28_v0  ;;  %v31_v4 = vld [vmem:[%s629_s3 + $0x18] sm:$0xff]  ;;  %v26_v5 = vld [vmem:[%s630_s0] sm:$0xff]  ;;  %v122_v8 = vld [vmem:[%s631_s5 + $0x8] sm:$0xff]  ;;  %v207_v16 = vshrl.u32 %v206_v14, 7  ;;  %v209_v17 = vand.u32 127, %v206_v14 }
   0x3   :  { %v504_v6 = vpack.c.bf16 %v31_v4, %v30_v2  ;;  %476 = vmatprep.mubr.msk.f32.mxu0 %vm39_vm0, %v26_v5  ;;  %v121_v7 = vld [vmem:[%s631_s5] sm:$0xff]  ;;  %v27_v10 = vld [vmem:[%s630_s0 + $0x8] sm:$0xff]  ;;  %v123_v11 = vld [vmem:[%s631_s5 + $0x10] sm:$0xff] }
   0x4   :  { %501 = vmatprep.subr.bf16.mxu0 %v500_v3  ;;  %v508_v9 = vpack.c.bf16 %v122_v8, %v121_v7  ;;  %v124_v12 = vld [vmem:[%s631_s5 + $0x18] sm:$0xff]  ;;  %vm210_vm1 = vcmp.eq.s32.totalorder %v207_v16, %v209_v17  ;;  %v213_v19 = vld [vmem:[%s632_s1] sm:$0xff]  ;;  %v214_v20 = vld [vmem:[%s632_s1 + $0x8] sm:$0xff]  ;;  %v423_v33 = vsub.s32 0, %v207_v16  ;;  %v430_v34 = vsub.s32 1, %v207_v16 }
   0x5   :  { %503 = vmatpush3.bf16.msra.mxu0 %v500_v3  ;;  %v512_v13 = vpack.c.bf16 %v124_v12, %v123_v11  ;;  %v448_v18 = vsel %vm210_vm1, 1.0, %v526_v15  ;;  %v443_v28 = vld [vmem:[%s633_s4] ss:$0 sm:$0xff]  ;;  %v237_v43 = vsub.s32 %v209_v17, %v207_v16 }
   0x6   :  { %505 = vmatprep.subr.bf16.mxu0 %v504_v6  ;;  %509 = vmatprep.subr.bf16.mxu1 %v508_v9  ;;  %v215_v21 = vsub.f32 1.0, %v448_v18  ;;  %v420_v35 = vld [vmem:[%s634_s2] sm:$0x3] }
   0x7   :  { %511 = vmatpush3.bf16.msra.mxu1 %v508_v9  ;;  %v424_v36 = vrot.slane %v420_v35, %v423_v33  ;;  %v431_v37 = vrot.slane %v420_v35, %v430_v34  ;;  %v449_v53 = vld [vmem:[%s635_s6] ss:$0 sm:$0xff] }
   0x8   :  { %513 = vmatprep.subr.bf16.mxu1 %v512_v13  ;;  %v216_v22 = vmul.f32 %v215_v21, %v213_v19  ;;  %v217_v23 = vmul.f32 %v215_v21, %v214_v20 }
   0x9   :  { %507 = vmatpush3.bf16.msra.mxu0 %v504_v6  ;;  %426 = vbcast.lane.b32.xlu1 %v424_v36, 256 }
   0xa   :  { %490 = vmatprep.subr.mxu0 %v526_v15  ;;  %v218_v24 = vadd.f32 %v448_v18, %v216_v22  ;;  %v219_v25 = vadd.f32 %v448_v18, %v217_v23 }
   0xb   :  { %515 = vmatpush3.bf16.msra.mxu1 %v512_v13 }
   0xc   :  { %477 = vmatmul.mubr.msk.f32.vlgmr.msra.gmra.mrb[0].mxu0 %vm39_vm0, %v27_v10  ;;  %495 = vmatprep.subr.mxu1 %v526_v15  ;;  %v221_v26 = vsel %vm220_vm2, %v218_v24, 0.0  ;;  %v224_v27 = vsel %vm220_vm2, %v219_v25, 0.0 }
   0xd   :  { %222 = vadd.xlane.f32.xlu0 %v221_v26  ;;  %492 = vmatprep.mubr.msk.f32.mxu0 %vm527_vm3, %v526_v15 }
   0xe   :  { %433 = vbcast.lane.b32.xlu1 %v431_v37, 256 }
  0x11   :  { %225 = vadd.xlane.f32.xlu0 %v224_v27 }
  0x7b   :  { %v427_v60 = vpop.permute.xlu1 %426 }
  0x80   :  { %v434_v61 = vpop.permute.xlu1 %433 }
  0x9a   :  { %v223_v38 = vpop.xlane.xlu0 %222 }
  0x9b   :  { %v227_v41 = vmax.f32 %v223_v38, 1.0 }
  0x9e   :  { %v226_v39 = vpop.xlane.xlu0 %225 }
  0x9f   :  { %v228_v40 = vmax.f32 %v226_v39, 1.0 }
  0xa1   :  { %518 = vrsqrt.f32 %v228_v40 }
  0xa2   :  { %520 = vrsqrt.f32 %v227_v41 }
  0xab   :  { %v519_v42 = vpop.eup %518 }
  0xac   :  { %v521_v44 = vpop.eup %520  ;;  %v232_v45 = vmul.f32 %v519_v42, %v219_v25  ;;  %v242_v46 = vrot.slane %v519_v42, %v237_v43 }
  0xad   :  { %v231_v47 = vmul.f32 %v521_v44, %v218_v24  ;;  %v238_v48 = vrot.slane %v521_v44, %v237_v43 }
  0xae   :  { %v264_v49 = vmul.f32 %v242_v46, %v232_v45 }
  0xaf   :  { %v263_v52 = vmul.f32 %v238_v48, %v231_v47 }
  0xdf   :  { %v478_v29 = vpop.f32.mrb[0].mxu0 }
  0xe0   :  { %v112_v30 = vpop.f32.mrb[1].mxu0  ;;  %v118_v32 = vadd.f32 %v478_v29, %v443_v28 }
  0xe1   :  { %v113_v31 = vadd.f32 %v443_v28, %v112_v30 }
  0xe3   :  { %487 = vmatprep.mubr.msk.f32.mxu1 %vm39_vm0, %v113_v31 }
  0xe4   :  { %488 = vmatmul.mubr.msk.f32.vlgmr.msra.gmra.mrb[0].mxu1 %vm39_vm0, %v118_v32 }
  0xe5   :  { %497 = vmatprep.mubr.msk.f32.mxu1 %vm527_vm3, %v526_v15 }
 0x1b7   :  { %v489_v50 = vpop.f32.mrb[0].mxu1 }
 0x1b8   :  { %v197_v51 = vpop.f32.mrb[1].mxu1  ;;  %496 = vmatpush3.msra.mxu1 %v489_v50 }
 0x1b9   :  { %491 = vmatpush3.msra.mxu0 %v197_v51  ;;  %498 = vmatmul.mubr.msk.f32.vlgmr.msra.gmra.mrb[2].mxu1 %vm220_vm2, %v264_v49 }
 0x1ba   :  { %493 = vmatmul.mubr.msk.f32.vlgmr.msra.gmra.mrb[2].mxu0 %vm220_vm2, %v263_v52 }
 0x28c   :  { %v414_v54 = vpop.f32.mrb[2].mxu1 }
 0x28d   :  { %v341_v55 = vpop.f32.mrb[2].mxu0  ;;  %v415_v56 = vadd.f32 %v449_v53, %v414_v54  ;;  %v499_v57 = vpop.f32.mrb[3].mxu1 }
 0x28e   :  { %v342_v58 = vadd.f32 %v449_v53, %v341_v55  ;;  %v494_v59 = vpop.f32.mrb[3].mxu0 }
 0x28f   :  { %522 = vtanh.f32 %v415_v56 }
 0x290   :  { %524 = vtanh.f32 %v342_v58 }
 0x299   :  { %v523_v62 = vpop.eup %522 }
 0x29a   :  { %v525_v63 = vpop.eup %524  ;;  %v436_v0 = vmul.f32 %v523_v62, %v434_v61 }
 0x29b   :  { %v435_v1 = vmul.f32 %v525_v63, %v427_v60 }
 0x29c   :  { %438 = vst.msk [vmem:[%s636_s7 + $0x8] sm:$0xff] %vm39_vm0, %v436_v0 }
 0x29d   :  { %437 = vst.msk [vmem:[%s636_s7] sm:$0xff] %vm39_vm0, %v435_v1 }

// kernel: split.0
= control target key start
LH: loop header
LB: loop body
LE: loop exit
PB: predicated region body
PF: predicated region fallthrough
CT: control target
= control target key end

     0   :  { %v3_v0 = vlaneseq  ;;  %s46_s0 = inlined_call_operand.vmem [shape: f32[2,8,68], index: 0, kind: input, shape index: {}]   ;;  %s47_s1 = inlined_call_operand.vmem [shape: f32[2,8,32], index: 1, kind: output, shape index: {}]  }
   0x1   :  { %v2_v1 = vld [vmem:[%s46_s0] sm:$0xff]  ;;  %v20_v3 = vld [vmem:[%s46_s0 + $0x8] sm:$0xff]  ;;  %s23_s0 = smov 92  }
   0x2   :  { %v4_v2 = vand.u32 127, %v3_v0 }
   0x4   :  { %vm5_vm0 = vcmp.lt.s32.totalorder %v4_v2, 36 }
   0x5   :  { %v6_v4 = vsel %vm5_vm0, 0, %v2_v1  ;;  %v15_v5 = vsel %vm5_vm0, 0, %v20_v3 }
   0x6   :  { %7 = vrot.lane.b32.xlu0 %v6_v4, %s23_s0 }
   0xa   :  { %16 = vrot.lane.b32.xlu0 %v15_v5, %s23_s0 }
  0x78   :  { %v8_v6 = vpop.permute.xlu0 %7 }
  0x79   :  { %9 = vst [vmem:[%s47_s1] sm:$0xff] %v8_v6 }
  0x7c   :  { %v17_v7 = vpop.permute.xlu0 %16 }
  0x7d   :  { %21 = vst [vmem:[%s47_s1 + $0x8] sm:$0xff] %v17_v7 }

// kernel: jvp__.5
= control target key start
LH: loop header
LB: loop body
LE: loop exit
PB: predicated region body
PF: predicated region fallthrough
CT: control target
= control target key end

     0   :  { %vm38_vm0 = vcmask 556032   ;;  %vm45_vm1 = vcmask 1043456   ;;  %vm234_vm2 = vcmask 261120   ;;  %vm253_vm3 = vcmask 1041409   ;;  %s485_s1 = inlined_call_operand.vmem [shape: f32[68,32], index: 1, kind: input, shape index: {}]   ;;  %s486_s3 = inlined_call_operand.vmem [shape: f32[68,32], index: 3, kind: input, shape index: {}]   ;;  %s487_s0 = inlined_call_operand.vmem [shape: f32[2,8,68], index: 0, kind: input, shape index: {}]   ;;  %s488_s2 = inlined_call_operand.vmem [shape: f32[1,32], index: 2, kind: input, shape index: {}]   ;;  %s489_s4 = inlined_call_operand.vmem [shape: f32[1,32], index: 4, kind: input, shape index: {}]   ;;  %s490_s5 = inlined_call_operand.vmem [shape: f32[2,32], index: 5, kind: output, shape index: {}]  }
   0x1   :  { %v22_v0 = vld [vmem:[%s485_s1] sm:$0xff]  ;;  %v23_v1 = vld [vmem:[%s485_s1 + $0x8] sm:$0xff]  ;;  %v24_v2 = vld [vmem:[%s485_s1 + $0x10] sm:$0xff]  ;;  %vm256_vm4 = vcmask 254976  }
   0x2   :  { %v334_v3 = vpack.c.bf16 %v23_v1, %v22_v0  ;;  %v25_v4 = vld [vmem:[%s485_s1 + $0x18] sm:$0xff]  ;;  %v26_v6 = vld [vmem:[%s485_s1 + $0x20] sm:$0xff]  ;;  %v27_v7 = vld [vmem:[%s485_s1 + $0x28] sm:$0xff] }
   0x3   :  { %v338_v5 = vpack.c.bf16 %v25_v4, %v24_v2  ;;  %v124_v8 = vld [vmem:[%s486_s3] sm:$0xff]  ;;  %v125_v9 = vld [vmem:[%s486_s3 + $0x8] sm:$0xff]  ;;  %v126_v12 = vld [vmem:[%s486_s3 + $0x10] sm:$0xff]  ;;  %v342_v14 = vpack.c.bf16 %v27_v7, %v26_v6 }
   0x4   :  { %335 = vmatprep.subr.bf16.mxu0 %v334_v3  ;;  %v20_v10 = vld [vmem:[%s487_s0] sm:$0xff]  ;;  %v350_v11 = vpack.c.bf16 %v125_v9, %v124_v8  ;;  %v127_v13 = vld [vmem:[%s486_s3 + $0x18] sm:$0xff]  ;;  %v129_v17 = vld [vmem:[%s486_s3 + $0x28] sm:$0xff] }
   0x5   :  { %337 = vmatpush3.bf16.msra.mxu0 %v334_v3  ;;  %310 = vmatprep.mubr.msk.f32.mxu0 %vm38_vm0, %v20_v10  ;;  %v354_v15 = vpack.c.bf16 %v127_v13, %v126_v12  ;;  %v128_v16 = vld [vmem:[%s486_s3 + $0x20] sm:$0xff]  ;;  %v28_v18 = vld [vmem:[%s485_s1 + $0x30] sm:$0xff]  ;;  %v29_v19 = vld [vmem:[%s485_s1 + $0x38] sm:$0xff] }
   0x6   :  { %339 = vmatprep.subr.bf16.mxu0 %v338_v5  ;;  %331 = vmatprep.mubr.msk.f32.mxu1 %vm38_vm0, %v20_v10  ;;  %v358_v20 = vpack.c.bf16 %v129_v17, %v128_v16  ;;  %v346_v21 = vpack.c.bf16 %v29_v19, %v28_v18  ;;  %v130_v22 = vld [vmem:[%s486_s3 + $0x30] sm:$0xff]  ;;  %v131_v23 = vld [vmem:[%s486_s3 + $0x38] sm:$0xff]  ;;  %v30_v25 = vld [vmem:[%s485_s1 + $0x40] sm:$0xf] }
   0x7   :  { %351 = vmatprep.subr.bf16.mxu1 %v350_v11  ;;  %v362_v24 = vpack.c.bf16 %v131_v23, %v130_v22  ;;  %v132_v26 = vld [vmem:[%s486_s3 + $0x40] sm:$0xf]  ;;  %v21_v27 = vld [vmem:[%s487_s0 + $0x8] sm:$0xff] }
   0x8   :  { %353 = vmatpush3.bf16.msra.mxu1 %v350_v11  ;;  %v262_v28 = vld [vmem:[%s488_s2] ss:$0 sm:$0xff] }
   0x9   :  { %341 = vmatpush3.bf16.msra.mxu0 %v338_v5  ;;  %355 = vmatprep.subr.bf16.mxu1 %v354_v15  ;;  %v266_v39 = vld [vmem:[%s489_s4] ss:$0 sm:$0xff] }
   0xa   :  { %343 = vmatprep.subr.bf16.mxu0 %v342_v14 }
   0xc   :  { %357 = vmatpush3.bf16.msra.mxu1 %v354_v15 }
   0xd   :  { %345 = vmatpush3.bf16.msra.mxu0 %v342_v14  ;;  %359 = vmatprep.subr.bf16.mxu1 %v358_v20 }
   0xe   :  { %347 = vmatprep.subr.bf16.mxu0 %v346_v21 }
  0x10   :  { %361 = vmatpush3.bf16.msra.mxu1 %v358_v20 }
  0x11   :  { %349 = vmatpush3.bf16.msra.mxu0 %v346_v21  ;;  %363 = vmatprep.subr.bf16.mxu1 %v362_v24 }
  0x12   :  { %308 = vmatprep.subr.msk.mxu0 %vm45_vm1, %v30_v25 }
  0x14   :  { %365 = vmatpush3.bf16.msra.mxu1 %v362_v24 }
  0x15   :  { %309 = vmatpush3.msk.msra.mxu0 %vm45_vm1, %v30_v25  ;;  %329 = vmatprep.subr.msk.mxu1 %vm45_vm1, %v132_v26 }
  0x16   :  { %311 = vmatmul.mubr.msk.f32.vlgmr.msra.gmra.mrb[0].mxu0 %vm38_vm0, %v21_v27 }
  0x18   :  { %330 = vmatpush3.msk.msra.mxu1 %vm45_vm1, %v132_v26 }
  0x19   :  { %332 = vmatmul.mubr.msk.f32.vlgmr.msra.gmra.mrb[0].mxu1 %vm38_vm0, %v21_v27 }
  0xe9   :  { %v312_v29 = vpop.f32.mrb[0].mxu0 }
  0xea   :  { %v121_v30 = vadd.f32 %v312_v29, %v262_v28  ;;  %v115_v31 = vpop.f32.mrb[1].mxu0 }
  0xeb   :  { %v116_v32 = vadd.f32 %v262_v28, %v115_v31 }
  0xec   :  { %v219_v33 = vsub.f32 0.0, %v121_v30  ;;  %v333_v34 = vpop.f32.mrb[0].mxu1 }
  0xed   :  { %v218_v35 = vsub.f32 0.0, %v116_v32  ;;  %v209_v36 = vpop.f32.mrb[1].mxu1  ;;  %v215_v40 = vadd.f32 %v333_v34, %v266_v39 }
  0xee   :  { %v222_v37 = vmul.f32 1.442695, %v219_v33  ;;  %v210_v41 = vadd.f32 %v266_v39, %v209_v36 }
  0xef   :  { %v220_v38 = vmul.f32 1.442695, %v218_v35 }
  0xf0   :  { %366 = vpow2.f32 %v222_v37 }
  0xf1   :  { %368 = vpow2.f32 %v220_v38 }
  0xf2   :  { %370 = vtanh.f32 %v215_v40 }
  0xf3   :  { %372 = vtanh.f32 %v210_v41 }
  0xfa   :  { %v367_v42 = vpop.eup %366 }
  0xfb   :  { %v369_v43 = vpop.eup %368  ;;  %v225_v44 = vadd.f32 1.0, %v367_v42 }
  0xfc   :  { %v224_v45 = vadd.f32 1.0, %v369_v43  ;;  %v371_v46 = vpop.eup %370 }
  0xfd   :  { %374 = vrcp.f32 %v225_v44  ;;  %v373_v47 = vpop.eup %372 }
  0xfe   :  { %376 = vrcp.f32 %v224_v45 }
 0x107   :  { %v375_v48 = vpop.eup %374 }
 0x108   :  { %v377_v49 = vpop.eup %376  ;;  %v233_v50 = vmul.f32 %v375_v48, %v371_v46 }
 0x109   :  { %v232_v51 = vmul.f32 %v377_v49, %v373_v47 }
 0x10a   :  { %v242_v52 = vsel %vm234_vm2, %v233_v50, 0.0 }
 0x10b   :  { %v243_v53 = vrot.slane %v242_v52, 4  ;;  %v235_v54 = vsel %vm234_vm2, %v232_v51, 0.0 }
 0x10c   :  { %v236_v55 = vrot.slane %v235_v54, 4 }
 0x10d   :  { %v244_v56 = vadd.f32 %v243_v53, %v242_v52 }
 0x10e   :  { %v237_v57 = vadd.f32 %v236_v55, %v235_v54 }
 0x10f   :  { %v245_v58 = vrot.slane %v244_v56, 2 }
 0x110   :  { %v238_v59 = vrot.slane %v237_v57, 2 }
 0x111   :  { %v246_v60 = vadd.f32 %v245_v58, %v244_v56 }
 0x112   :  { %v239_v61 = vadd.f32 %v238_v59, %v237_v57 }
 0x113   :  { %v247_v62 = vrot.slane %v246_v60, 1 }
 0x114   :  { %v240_v63 = vrot.slane %v239_v61, 1 }
 0x115   :  { %v248_v0 = vadd.f32 %v247_v62, %v246_v60 }
 0x116   :  { %v241_v1 = vadd.f32 %v240_v63, %v239_v61 }
 0x117   :  { %378 = vtanh.f32 %v248_v0 }
 0x118   :  { %380 = vtanh.f32 %v241_v1 }
 0x121   :  { %v379_v2 = vpop.eup %378 }
 0x122   :  { %v381_v3 = vpop.eup %380 }
 0x123   :  { %v254_v4 = vsel %vm253_vm3, %v379_v2, %v381_v3 }
 0x124   :  { %257 = vst.msk [vmem:[%s490_s5] sm:$0x3] %vm256_vm4, %v254_v4 }

// kernel: regressor_score_adj.1
= control target key start
LH: loop header
LB: loop body
LE: loop exit
PB: predicated region body
PF: predicated region fallthrough
CT: control target
= control target key end

     0   :  { %v15_v0 = vlaneseq  ;;  %v113_v1 = vmov 1966171168   ;;  %s153_s0 = inlined_call_operand.vmem [shape: f32[2,8,8], index: 0, kind: input, shape index: {}]   ;;  %s154_s1 = inlined_call_operand.vmem [shape: f32[2,8], index: 1, kind: input, shape index: {}]   ;;  %s155_s2 = inlined_call_operand.hbm [shape: f32[2,8,8], index: 2, kind: output, shape index: {}]  }
   0x1   :  { %v33_v2 = vunpack.c.l.s4 %v113_v1 }
   0x2   :  { %7 = vsyncpa [#allocation3], 0  ;;  %v16_v3 = vshrl.u32 %v15_v0, 7  ;;  %v12_v4 = vld [vmem:[%s154_s1] sm:$0x3]  ;;  %vm66_vm0 = vcmask 64512  }
   0x3   :  { %v34_v5 = vunpack.c.0.s8 %v33_v2  ;;  %v13_v17 = vld [vmem:[%s153_s0] sm:$0xff]  ;;  %v14_v20 = vld [vmem:[%s153_s0 + $0x8] sm:$0xff]  ;;  %s114_s14 = smov [#allocation2]  }
   0x4   :  { %v17_v6 = vsub.s32 0, %v16_v3  ;;  %v24_v7 = vsub.s32 1, %v16_v3  ;;  %s74_s15 = sshll.u32 %s114_s14, 4  ;;  %s75_s15 = int_to_ptr.vmem [resolvable:$true] %s74_s15 }
   0x5   :  { %v37_v8 = vsub.s32 %v34_v5, %v16_v3  ;;  %s89_s16 = scalar_lea.vmem %s75_s15, 256  ;;  %p94_p1 = scmp.lt.s32.totalorder %s75_s15, %s75_s15 }
   0x6   :  { %v18_v9 = vrot.slane %v12_v4, %v17_v6  ;;  %v25_v11 = vrot.slane %v12_v4, %v24_v7  ;;  %p90_p0 = scmp.ne.s32.totalorder %s75_s15, %s89_s16  ;;  %p95_p2 = scmp.lt.s32.totalorder %s89_s16, %s89_s16 }
   0x7   :  { %v38_v10 = vrot.slane %v12_v4, %v37_v8 }
   0x8   :  { %20 = vbcast.lane.b32.xlu0 %v18_v9, 256  ;;  %p96_p3 = por %p95_p2, %p94_p1 }
   0x9   :  { %v39_v12 = vcombine.high %v38_v10, %v38_v10  ;;  %v46_v13 = vrot.slane %v38_v10, %v37_v8 }
   0xa   :  { %p97_p4 = pnand %p96_p3, %p90_p0 }
   0xb   :  { %v57_v14 = vrot.slane %v46_v13, %v17_v6  ;;  %v53_v15 = vrot.slane %v39_v12, %v37_v8 }
   0xc   :  { %27 = vbcast.lane.b32.xlu0 %v25_v11, 256 }
   0xd   :  { %v61_v16 = vrot.slane %v53_v15, %v17_v6 }
  0x7a   :  { %v21_v18 = vpop.permute.xlu0 %20 }
  0x7b   :  { %v29_v19 = vmul.f32 %v21_v18, %v13_v17 }
  0x7d   :  { %v64_v21 = vmul.f32 %v57_v14, %v29_v19 }
  0x7e   :  { %v28_v22 = vpop.permute.xlu0 %27 }
  0x7f   :  { %67 = vst.msk [vmem:[#allocation2] sm:$0xff] %vm66_vm0, %v64_v21  ;;  %v30_v23 = vmul.f32 %v28_v22, %v14_v20 }
  0x81   :  { %v65_v24 = vmul.f32 %v61_v16, %v30_v23 }
  0x83   :  { %68 = vst.msk [vmem:[#allocation2 + $0x8] sm:$0xff] %vm66_vm0, %v65_v24 }
  0x84   :  { %100 = shalt.err (!%p97_p4)
}
  0x85   :  { %s101_s0 = scalar_lea.hbm %s155_s2, 256 }
  0x86   :  { %p102_p5 = scmp.ne.s32.totalorder %s155_s2, %s101_s0  ;;  %p105_p6 = scmp.lt.u32.totalorder %s101_s0, %s155_s2 }
  0x88   :  { %p107_p7 = pnand %p105_p6, %p102_p5 }
  0x8a   :  { %110 = shalt.err (!%p107_p7)
}
  0x8b   :  { %s115_s23 = smov 128   ;;  %s116_s24 = smov 8  }
  0x8c   :  { %80 = dma.vmem_to_hbm [thread:$0]  %s75_s15, 256, %s155_s2, [#allocation3], %s115_s23, %s115_s23, %s116_s24  }
  0x8d   :  { %111 = dma.done.wait [#allocation3], 256  }
  0x8e   :  { %112 = vsyncadd [#allocation3], 4294967040 }
  0x8f   :  { %84 = vsyncpa [#allocation3], 1 }

</bundles_post_ra>
